<compile_context>
chip_gen: v7x
topology: tpu7x:2x2x1
jax: 0.10.0
libtpu: 0.0.40
codegen_flags: <defaults>
</compile_context>

<pallas_src>
import jax
import jax.numpy as jnp
from jax.experimental import pallas as pl
from jax.experimental.pallas import tpu as pltpu


def linear_resblock_kernel(x_ref, w1_ref, b1_ref, w2_ref, wr_ref, bo_ref, o_ref):
    x = x_ref[...]                                    # (TM, Cin) bf16

    # Residual branch: independent of the main branch, so the compiler can push this
    # MXU op while the main-branch ReLU/bias work is still in flight.
    res = jnp.dot(x, wr_ref[...], preferred_element_type=jnp.float32)

    # Main branch: ReLU -> Linear1 (+b1, f32) -> ReLU -> Linear2 (f32 accumulation).
    h = jnp.maximum(x, 0.0).astype(jnp.bfloat16)
    h = jnp.dot(h, w1_ref[...], preferred_element_type=jnp.float32) + b1_ref[...]
    h = jnp.maximum(h, 0.0).astype(jnp.bfloat16)
    out = res + jnp.dot(h, w2_ref[...], preferred_element_type=jnp.float32) + bo_ref[...]

    o_ref[...] = out.astype(o_ref.dtype)


def _round_up(x, m):
    return ((x + m - 1) // m) * m


def _choose_tm(B):
    """Batch tile selection.

    Small B  -> one full tile (no wasted grid steps).
    Medium B -> two balanced tiles (>=2 'parallel' steps so v7x can use both
                TensorCores; near-zero extra cost on v5e/v6e).
    Large B  -> 512-1024 row tiles picked to minimize padding (best measured
                HBM-roofline fraction).
    Tiles aligned to 16 rows (bf16 sublane packing).
    """
    B16 = _round_up(B, 16)
    if B16 <= 256:
        return B16
    if B16 <= 2048:
        return _round_up((B16 + 1) // 2, 16)
    best_tm, best_pad = None, None
    for cand in (1024, 896, 768, 640, 512):
        pad = _round_up(B16, cand) - B16
        if best_pad is None or pad < best_pad:
            best_tm, best_pad = cand, pad
    return best_tm


def linear_resblock(x, w1, b1, w2, b2, wr, br, *, tm=None, out_dtype=None):
    """Forward of Linear_ResBlock.

    x : (B, Cin) activations.
    w*: (Cin, Cout) weights already transposed from PyTorch's [out, in] layout.
    b*: (Cout,) or (1, Cout) biases.
    """
    B, Cin = x.shape
    Cout = w2.shape[1]
    out_dtype = x.dtype if out_dtype is None else jnp.dtype(out_dtype)

    # ---- One-time weight / bias prep (bf16 MXU operands, folded output bias) ----
    # Lane-dense output guard: pad Cout to a multiple of 128 (no-op for Cout=256).
    Cout_p = max(_round_up(Cout, 128), 128)
    if Cout_p != Cout:
        pad_n = Cout_p - Cout
        w2 = jnp.pad(w2, ((0, 0), (0, pad_n)))
        wr = jnp.pad(wr, ((0, 0), (0, pad_n)))
        b2 = jnp.pad(jnp.reshape(b2, (-1,)), (0, pad_n))
        br = jnp.pad(jnp.reshape(br, (-1,)), (0, pad_n))

    w1_bf = w1.astype(jnp.bfloat16)                        # (Cin, Cin)
    w2_bf = w2.astype(jnp.bfloat16)                        # (Cin, Cout_p)
    wr_bf = wr.astype(jnp.bfloat16)                        # (Cin, Cout_p)
    b1_f = jnp.reshape(b1, (1, -1)).astype(jnp.float32)    # (1, Cin)
    bo_f = (jnp.reshape(b2, (1, -1)) + jnp.reshape(br, (1, -1))).astype(jnp.float32)

    # ---- Batch tiling + bf16 activation stream ----
    tm_sel = _choose_tm(B) if tm is None else min(tm, _round_up(B, 16))
    Bp = _round_up(B, tm_sel)
    x_bf = x.astype(jnp.bfloat16)
    x_p = x_bf if Bp == B else jnp.pad(x_bf, ((0, Bp - B), (0, 0)))

    # ---- Cost hint for XLA's scheduler around the custom call ----
    out_itemsize = jnp.dtype(out_dtype).itemsize
    bytes_accessed = (
        x_p.size * 2 + w1_bf.size * 2 + w2_bf.size * 2 + wr_bf.size * 2
        + b1_f.size * 4 + bo_f.size * 4 + Bp * Cout_p * out_itemsize)
    cost = pl.CostEstimate(
        flops=2 * Bp * (Cin * Cin + 2 * Cin * Cout_p),
        transcendentals=0,
        bytes_accessed=bytes_accessed)

    # Raise the scoped-VMEM limit only when the resident weights get large.
    vmem_need = (2 * tm_sel * Cin * 2                       # double-buffered x tiles (bf16)
                 + 2 * tm_sel * Cout_p * out_itemsize       # double-buffered out tiles
                 + (Cin * Cin + 2 * Cin * Cout_p) * 2       # resident bf16 weights
                 + (Cin + Cout_p) * 4)                      # resident f32 biases
    vmem_limit = None
    if vmem_need > 30 * (1 << 20):
        vmem_limit = min(int(vmem_need * 1.25), 48 * (1 << 20))
    # TODO(synk): for very large Cout on v7x (64 MiB VMEM) add a Cout grid axis that
    # tiles w2/wr as (Cin, tn) instead of keeping them fully VMEM resident.

    def _weight_spec(shape, single_buffer):
        if single_buffer:
            # Constant index_map -> not re-DMA'd; single-buffer to halve VMEM footprint.
            return pl.BlockSpec(shape, lambda i: (0, 0), pipeline_mode=pl.Buffered(1))
        return pl.BlockSpec(shape, lambda i: (0, 0))

    def _run(single_buffer_weights):
        in_specs = [
            pl.BlockSpec((tm_sel, Cin), lambda i: (i, 0)),                # x (pipelined)
            _weight_spec((Cin, Cin), single_buffer_weights),              # w1
            _weight_spec((1, Cin), single_buffer_weights),                # b1
            _weight_spec((Cin, Cout_p), single_buffer_weights),           # w2
            _weight_spec((Cin, Cout_p), single_buffer_weights),           # wr
            _weight_spec((1, Cout_p), single_buffer_weights),             # b2 + br folded
        ]
        return pl.pallas_call(
            linear_resblock_kernel,
            out_shape=jax.ShapeDtypeStruct((Bp, Cout_p), out_dtype),
            grid_spec=pltpu.PrefetchScalarGridSpec(
                num_scalar_prefetch=0,
                grid=(Bp // tm_sel,),
                in_specs=in_specs,
                out_specs=pl.BlockSpec((tm_sel, Cout_p), lambda i: (i, 0)),
            ),
            compiler_params=pltpu.CompilerParams(
                dimension_semantics=("parallel",),
                vmem_limit_bytes=vmem_limit),
            cost_estimate=cost,
        )(x_p, w1_bf, b1_f, w2_bf, wr_bf, bo_f)

    try:
        out = _run(single_buffer_weights=True)
    except Exception:
        # pipeline_mode=pl.Buffered(1) not supported on this jax build -> default buffering.
        out = _run(single_buffer_weights=False)

    if Bp != B:
        out = out[:B]
    if Cout_p != Cout:
        out = out[:, :Cout]
    return out


def reference(x, w1, b1, w2, b2, wr, br):
    h = jnp.maximum(x, 0.0)
    h = jnp.maximum(h @ w1 + b1.reshape(1, -1), 0.0)
    return (h @ w2 + b2.reshape(1, -1)) + (x @ wr + br.reshape(1, -1))


if __name__ == "__main__":
    # Shapes consistent with the module (input_size -> output_size). B chosen so the
    # batch grid has 2 balanced steps (no padding) and lane-aligned channel dims.
    B, INPUT_SIZE, OUTPUT_SIZE = 384, 128, 256

    key = jax.random.PRNGKey(0)
    kx, k1, k2, k3, k4, k5, k6 = jax.random.split(key, 7)

    x = jax.random.normal(kx, (B, INPUT_SIZE), dtype=jnp.float32)

    # nn.Linear(input_size, input_size): stored transposed as (in, out)
    w1 = jax.random.normal(k1, (INPUT_SIZE, INPUT_SIZE), dtype=jnp.float32) * 0.02
    b1 = jax.random.normal(k2, (INPUT_SIZE,), dtype=jnp.float32) * 0.01
    # nn.Linear(input_size, output_size)
    w2 = jax.random.normal(k3, (INPUT_SIZE, OUTPUT_SIZE), dtype=jnp.float32) * 0.02
    b2 = jax.random.normal(k4, (OUTPUT_SIZE,), dtype=jnp.float32) * 0.01
    # nn.Linear(input_size, output_size) residual path
    wr = jax.random.normal(k5, (INPUT_SIZE, OUTPUT_SIZE), dtype=jnp.float32) * 0.02
    br = jax.random.normal(k6, (OUTPUT_SIZE,), dtype=jnp.float32) * 0.01

    out = linear_resblock(x, w1, b1, w2, b2, wr, br)
    out = jax.block_until_ready(out)

    ref = reference(x, w1, b1, w2, b2, wr, br)
    assert out.shape == (B, OUTPUT_SIZE)
    # bf16 activation stream + bf16 MXU operands with f32 accumulation -> loosened
    # tolerance vs the f32 reference (residual skip-path also rounds to bf16).
    assert jnp.allclose(out, ref, atol=5e-2, rtol=5e-2), "mismatch vs JAX reference"

    print("KERNEL_OK")
</pallas_src>

<mosaic_0001>
module attributes {stable_mosaic.version = 11 : i64} {
  func.func @linear_resblock_kernel(%arg0: i32, %arg1: memref<192x128xbf16, #tpu.memory_space<vmem>>, %arg2: memref<128x128xbf16, #tpu.memory_space<vmem>>, %arg3: memref<1x128xf32, #tpu.memory_space<vmem>>, %arg4: memref<128x256xbf16, #tpu.memory_space<vmem>>, %arg5: memref<128x256xbf16, #tpu.memory_space<vmem>>, %arg6: memref<1x256xf32, #tpu.memory_space<vmem>>, %arg7: memref<192x256xf32, #tpu.memory_space<vmem>>) attributes {dimension_semantics = [#tpu.dimension_semantics<parallel>], iteration_bounds = array<i64: 2>, scalar_prefetch = 0 : i64, scratch_operands = 0 : i64, tpu.core_type = #tpu.core_type<tc>, window_params = [{transform_indices = @transform_0, window_bounds = array<i64: 192, 128>}, {pipeline_mode = #tpu.pipeline_mode<synchronous>, transform_indices = @transform_1, window_bounds = array<i64: 128, 128>}, {pipeline_mode = #tpu.pipeline_mode<synchronous>, transform_indices = @transform_2, window_bounds = array<i64: 1, 128>}, {pipeline_mode = #tpu.pipeline_mode<synchronous>, transform_indices = @transform_3, window_bounds = array<i64: 128, 256>}, {pipeline_mode = #tpu.pipeline_mode<synchronous>, transform_indices = @transform_4, window_bounds = array<i64: 128, 256>}, {pipeline_mode = #tpu.pipeline_mode<synchronous>, transform_indices = @transform_5, window_bounds = array<i64: 1, 256>}, {transform_indices = @transform_6, window_bounds = array<i64: 192, 256>}]} {
    %c0 = arith.constant 0 : index
    %c0_0 = arith.constant 0 : index
    %0 = vector.load %arg1[%c0, %c0_0] : memref<192x128xbf16, #tpu.memory_space<vmem>>, vector<192x128xbf16>
    %c0_1 = arith.constant 0 : index
    %c0_2 = arith.constant 0 : index
    %1 = vector.load %arg5[%c0_1, %c0_2] : memref<128x256xbf16, #tpu.memory_space<vmem>>, vector<128x256xbf16>
    %cst = arith.constant dense<0.000000e+00> : vector<192x256xf32>
    %2 = tpu.matmul %0, %1, %cst {dimension_numbers = #tpu.dot_dimension_numbers<[1], [0], [0], [1], [0, 0, 1, 1], [], []>} : vector<192x128xbf16>, vector<128x256xbf16>, vector<192x256xf32> -> vector<192x256xf32>
    %cst_3 = arith.constant 0.000000e+00 : bf16
    %3 = vector.broadcast %cst_3 : bf16 to vector<192x128xbf16>
    %4 = arith.maximumf %0, %3 : vector<192x128xbf16>
    %c0_4 = arith.constant 0 : index
    %c0_5 = arith.constant 0 : index
    %5 = vector.load %arg2[%c0_4, %c0_5] : memref<128x128xbf16, #tpu.memory_space<vmem>>, vector<128x128xbf16>
    %cst_6 = arith.constant dense<0.000000e+00> : vector<192x128xf32>
    %6 = tpu.matmul %4, %5, %cst_6 {dimension_numbers = #tpu.dot_dimension_numbers<[1], [0], [0], [1], [0, 0, 1, 1], [], []>} : vector<192x128xbf16>, vector<128x128xbf16>, vector<192x128xf32> -> vector<192x128xf32>
    %c0_7 = arith.constant 0 : index
    %c0_8 = arith.constant 0 : index
    %7 = vector.load %arg3[%c0_7, %c0_8] : memref<1x128xf32, #tpu.memory_space<vmem>>, vector<1x128xf32>
    %8 = vector.broadcast %7 : vector<1x128xf32> to vector<192x128xf32>
    %9 = arith.addf %6, %8 : vector<192x128xf32>
    %cst_9 = arith.constant 0.000000e+00 : f32
    %10 = vector.broadcast %cst_9 : f32 to vector<192x128xf32>
    %11 = arith.maximumf %9, %10 : vector<192x128xf32>
    %12 = arith.truncf %11 : vector<192x128xf32> to vector<192x128xbf16>
    %c0_10 = arith.constant 0 : index
    %c0_11 = arith.constant 0 : index
    %13 = vector.load %arg4[%c0_10, %c0_11] : memref<128x256xbf16, #tpu.memory_space<vmem>>, vector<128x256xbf16>
    %cst_12 = arith.constant dense<0.000000e+00> : vector<192x256xf32>
    %14 = tpu.matmul %12, %13, %cst_12 {dimension_numbers = #tpu.dot_dimension_numbers<[1], [0], [0], [1], [0, 0, 1, 1], [], []>} : vector<192x128xbf16>, vector<128x256xbf16>, vector<192x256xf32> -> vector<192x256xf32>
    %15 = arith.addf %2, %14 : vector<192x256xf32>
    %c0_13 = arith.constant 0 : index
    %c0_14 = arith.constant 0 : index
    %16 = vector.load %arg6[%c0_13, %c0_14] : memref<1x256xf32, #tpu.memory_space<vmem>>, vector<1x256xf32>
    %17 = vector.broadcast %16 : vector<1x256xf32> to vector<192x256xf32>
    %18 = arith.addf %15, %17 : vector<192x256xf32>
    %c0_15 = arith.constant 0 : index
    %c0_16 = arith.constant 0 : index
    %19 = vector.load %arg7[%c0_15, %c0_16] : memref<192x256xf32, #tpu.memory_space<vmem>>, vector<192x256xf32>
    tpu.vector_store %arg7[%c0_15, %c0_16], %18 {strides = array<i32>} : memref<192x256xf32, #tpu.memory_space<vmem>>, vector<192x256xf32>,
    return
  }
  func.func @transform_0(%arg0: i32) -> (i32, i32) {
    %c0_i32 = arith.constant 0 : i32
    %c0_i32_0 = arith.constant 0 : i32
    return %arg0, %c0_i32 : i32, i32
  }
  func.func @transform_1(%arg0: i32) -> (i32, i32) {
    %c0_i32 = arith.constant 0 : i32
    %c0_i32_0 = arith.constant 0 : i32
    %c0_i32_1 = arith.constant 0 : i32
    return %c0_i32, %c0_i32_0 : i32, i32
  }
  func.func @transform_2(%arg0: i32) -> (i32, i32) {
    %c0_i32 = arith.constant 0 : i32
    %c0_i32_0 = arith.constant 0 : i32
    %c0_i32_1 = arith.constant 0 : i32
    return %c0_i32, %c0_i32_0 : i32, i32
  }
  func.func @transform_3(%arg0: i32) -> (i32, i32) {
    %c0_i32 = arith.constant 0 : i32
    %c0_i32_0 = arith.constant 0 : i32
    %c0_i32_1 = arith.constant 0 : i32
    return %c0_i32, %c0_i32_0 : i32, i32
  }
  func.func @transform_4(%arg0: i32) -> (i32, i32) {
    %c0_i32 = arith.constant 0 : i32
    %c0_i32_0 = arith.constant 0 : i32
    %c0_i32_1 = arith.constant 0 : i32
    return %c0_i32, %c0_i32_0 : i32, i32
  }
  func.func @transform_5(%arg0: i32) -> (i32, i32) {
    %c0_i32 = arith.constant 0 : i32
    %c0_i32_0 = arith.constant 0 : i32
    %c0_i32_1 = arith.constant 0 : i32
    return %c0_i32, %c0_i32_0 : i32, i32
  }
  func.func @transform_6(%arg0: i32) -> (i32, i32) {
    %c0_i32 = arith.constant 0 : i32
    %c0_i32_0 = arith.constant 0 : i32
    return %arg0, %c0_i32 : i32, i32
  }
}

module attributes {stable_mosaic.version = 11 : i64} {
  func.func @linear_resblock_kernel(%arg0: i32, %arg1: memref<192x128xbf16, #tpu.memory_space<vmem>>, %arg2: memref<128x128xbf16, #tpu.memory_space<vmem>>, %arg3: memref<1x128xf32, #tpu.memory_space<vmem>>, %arg4: memref<128x256xbf16, #tpu.memory_space<vmem>>, %arg5: memref<128x256xbf16, #tpu.memory_space<vmem>>, %arg6: memref<1x256xf32, #tpu.memory_space<vmem>>, %arg7: memref<192x256xf32, #tpu.memory_space<vmem>>) attributes {dimension_semantics = [#tpu.dimension_semantics<parallel>], iteration_bounds = array<i64: 2>, scalar_prefetch = 0 : i64, scratch_operands = 0 : i64, tpu.core_type = #tpu.core_type<tc>, window_params = [{transform_indices = @transform_0, window_bounds = array<i64: 192, 128>}, {pipeline_mode = #tpu.pipeline_mode<synchronous>, transform_indices = @transform_1, window_bounds = array<i64: 128, 128>}, {pipeline_mode = #tpu.pipeline_mode<synchronous>, transform_indices = @transform_2, window_bounds = array<i64: 1, 128>}, {pipeline_mode = #tpu.pipeline_mode<synchronous>, transform_indices = @transform_3, window_bounds = array<i64: 128, 256>}, {pipeline_mode = #tpu.pipeline_mode<synchronous>, transform_indices = @transform_4, window_bounds = array<i64: 128, 256>}, {pipeline_mode = #tpu.pipeline_mode<synchronous>, transform_indices = @transform_5, window_bounds = array<i64: 1, 256>}, {transform_indices = @transform_6, window_bounds = array<i64: 192, 256>}]} {
    %c0 = arith.constant 0 : index
    %c0_0 = arith.constant 0 : index
    %0 = vector.load %arg1[%c0, %c0_0] : memref<192x128xbf16, #tpu.memory_space<vmem>>, vector<192x128xbf16>
    %c0_1 = arith.constant 0 : index
    %c0_2 = arith.constant 0 : index
    %1 = vector.load %arg5[%c0_1, %c0_2] : memref<128x256xbf16, #tpu.memory_space<vmem>>, vector<128x256xbf16>
    %cst = arith.constant dense<0.000000e+00> : vector<192x256xf32>
    %2 = tpu.matmul %0, %1, %cst {dimension_numbers = #tpu.dot_dimension_numbers<[1], [0], [0], [1], [0, 0, 1, 1], [], []>} : vector<192x128xbf16>, vector<128x256xbf16>, vector<192x256xf32> -> vector<192x256xf32>
    %cst_3 = arith.constant 0.000000e+00 : bf16
    %3 = vector.broadcast %cst_3 : bf16 to vector<192x128xbf16>
    %4 = arith.maximumf %0, %3 : vector<192x128xbf16>
    %c0_4 = arith.constant 0 : index
    %c0_5 = arith.constant 0 : index
    %5 = vector.load %arg2[%c0_4, %c0_5] : memref<128x128xbf16, #tpu.memory_space<vmem>>, vector<128x128xbf16>
    %cst_6 = arith.constant dense<0.000000e+00> : vector<192x128xf32>
    %6 = tpu.matmul %4, %5, %cst_6 {dimension_numbers = #tpu.dot_dimension_numbers<[1], [0], [0], [1], [0, 0, 1, 1], [], []>} : vector<192x128xbf16>, vector<128x128xbf16>, vector<192x128xf32> -> vector<192x128xf32>
    %c0_7 = arith.constant 0 : index
    %c0_8 = arith.constant 0 : index
    %7 = vector.load %arg3[%c0_7, %c0_8] : memref<1x128xf32, #tpu.memory_space<vmem>>, vector<1x128xf32>
    %8 = vector.broadcast %7 : vector<1x128xf32> to vector<192x128xf32>
    %9 = arith.addf %6, %8 : vector<192x128xf32>
    %cst_9 = arith.constant 0.000000e+00 : f32
    %10 = vector.broadcast %cst_9 : f32 to vector<192x128xf32>
    %11 = arith.maximumf %9, %10 : vector<192x128xf32>
    %12 = arith.truncf %11 : vector<192x128xf32> to vector<192x128xbf16>
    %c0_10 = arith.constant 0 : index
    %c0_11 = arith.constant 0 : index
    %13 = vector.load %arg4[%c0_10, %c0_11] : memref<128x256xbf16, #tpu.memory_space<vmem>>, vector<128x256xbf16>
    %cst_12 = arith.constant dense<0.000000e+00> : vector<192x256xf32>
    %14 = tpu.matmul %12, %13, %cst_12 {dimension_numbers = #tpu.dot_dimension_numbers<[1], [0], [0], [1], [0, 0, 1, 1], [], []>} : vector<192x128xbf16>, vector<128x256xbf16>, vector<192x256xf32> -> vector<192x256xf32>
    %15 = arith.addf %2, %14 : vector<192x256xf32>
    %c0_13 = arith.constant 0 : index
    %c0_14 = arith.constant 0 : index
    %16 = vector.load %arg6[%c0_13, %c0_14] : memref<1x256xf32, #tpu.memory_space<vmem>>, vector<1x256xf32>
    %17 = vector.broadcast %16 : vector<1x256xf32> to vector<192x256xf32>
    %18 = arith.addf %15, %17 : vector<192x256xf32>
    %c0_15 = arith.constant 0 : index
    %c0_16 = arith.constant 0 : index
    %19 = vector.load %arg7[%c0_15, %c0_16] : memref<192x256xf32, #tpu.memory_space<vmem>>, vector<192x256xf32>
    tpu.vector_store %arg7[%c0_15, %c0_16], %18 {strides = array<i32>} : memref<192x256xf32, #tpu.memory_space<vmem>>, vector<192x256xf32>,
    return
  }
  func.func @transform_0(%arg0: i32) -> (i32, i32) {
    %c0_i32 = arith.constant 0 : i32
    %c0_i32_0 = arith.constant 0 : i32
    return %arg0, %c0_i32 : i32, i32
  }
  func.func @transform_1(%arg0: i32) -> (i32, i32) {
    %c0_i32 = arith.constant 0 : i32
    %c0_i32_0 = arith.constant 0 : i32
    %c0_i32_1 = arith.constant 0 : i32
    return %c0_i32, %c0_i32_0 : i32, i32
  }
  func.func @transform_2(%arg0: i32) -> (i32, i32) {
    %c0_i32 = arith.constant 0 : i32
    %c0_i32_0 = arith.constant 0 : i32
    %c0_i32_1 = arith.constant 0 : i32
    return %c0_i32, %c0_i32_0 : i32, i32
  }
  func.func @transform_3(%arg0: i32) -> (i32, i32) {
    %c0_i32 = arith.constant 0 : i32
    %c0_i32_0 = arith.constant 0 : i32
    %c0_i32_1 = arith.constant 0 : i32
    return %c0_i32, %c0_i32_0 : i32, i32
  }
  func.func @transform_4(%arg0: i32) -> (i32, i32) {
    %c0_i32 = arith.constant 0 : i32
    %c0_i32_0 = arith.constant 0 : i32
    %c0_i32_1 = arith.constant 0 : i32
    return %c0_i32, %c0_i32_0 : i32, i32
  }
  func.func @transform_5(%arg0: i32) -> (i32, i32) {
    %c0_i32 = arith.constant 0 : i32
    %c0_i32_0 = arith.constant 0 : i32
    %c0_i32_1 = arith.constant 0 : i32
    return %c0_i32, %c0_i32_0 : i32, i32
  }
  func.func @transform_6(%arg0: i32) -> (i32, i32) {
    %c0_i32 = arith.constant 0 : i32
    %c0_i32_0 = arith.constant 0 : i32
    return %arg0, %c0_i32 : i32, i32
  }
}

</mosaic_0001>

<bundles_post_ra>
// kernel: tpu_custom_call.1
= control target key start
LH: loop header
LB: loop body
LE: loop exit
PB: predicated region body
PF: predicated region fallthrough
CT: control target
= control target key end

     0   :  { %s2802_s0 = inlined_call_operand.hbm [shape: bf16[384,128], index: 0, kind: input, shape index: {}]   ;;  %s2803_s1 = inlined_call_operand.hbm [shape: bf16[128,128], index: 1, kind: input, shape index: {}]   ;;  %s2804_s2 = inlined_call_operand.vmem [shape: f32[1,128], index: 2, kind: input, shape index: {}]   ;;  %s2805_s3 = inlined_call_operand.hbm [shape: bf16[128,256], index: 3, kind: input, shape index: {}]   ;;  %s2806_s4 = inlined_call_operand.hbm [shape: bf16[128,256], index: 4, kind: input, shape index: {}]   ;;  %s2807_s5 = inlined_call_operand.vmem [shape: f32[1,256], index: 5, kind: input, shape index: {}]   ;;  %s2808_s6 = inlined_call_operand.hbm [shape: f32[384,256], index: 6, kind: output, shape index: {}]  }
   0x1   :  { %2814 = sst [smem:[#allocation15_spill]] %s2803_s1 }
   0x2   :  { %11 = vsyncpa [#allocation3], 0 }
   0x3   :  { %13 = vsyncpa [#allocation3 + $0x1], 0 }
   0x4   :  { %14 = vsyncpa [#allocation6], 0 }
   0x5   :  { %15 = vsyncpa [#allocation9], 0 }
   0x6   :  { %16 = vsyncpa [#allocation4], 0 }
   0x7   :  { %18 = vsyncpa [#allocation4 + $0x1], 0  ;;  %s2068_s21 = smov 0   ;;  %s2070_s22 = smov 0  }
   0x8   :  { %s2072_s23 = smov 0   ;;  %s2074_s24 = smov 0  }
   0x9 LB: > { %s2089_s25 = sadd.s32 4294967295, %s2019_s24   ;;  %s1468_s26 = sadd.s32 4294967294, %s2019_s24   ;;  %s2019_s24 = sphi %s2074_s24, %s2837_s24   ;;  %s2015_s23 = sphi %s2072_s23, %s2836_s23   ;;  %s2011_s22 = sphi %s2070_s22, %s2835_s22   ;;  %s2007_s21 = sphi %s2068_s21, %s2834_s21  }
   0xa   : > { %p44_p0 = scmp.ne.s32.totalorder %s2011_s22, %s2007_s21  ;;  %p2809_p1 = scmp.eq.s32.totalorder %s2089_s25, 0 }
   0xb   : > { %p179_p3 = scmp.eq.s32.totalorder %s1468_s26, 1  ;;  %p1469_p5 = scmp.ge.s32.totalorder %s2019_s24, 1 }
   0xc   : > { %p2098_p4 = por %p2809_p1, %p44_p0  ;;  %p186_p7 = scmp.lt.s32.totalorder %s2019_s24, 3 }
   0xd   : > { %p2103_p6 = por %p179_p3, %p44_p0  ;;  %s2021_s30 = smov [#allocation5]  }
   0xe   : > { %s2815_s27 = scalar_select %p2098_p4, 1, 0 }
   0xf   : > { %s2816_s28 = scalar_select %p2103_p6, 1, 0 }
  0x10   : > { %p2108_p8 = pnand %p1469_p5, %p186_p7  ;;  %s198_s7 = sshll.u32 %s2021_s30, 4  ;;  %s2112_s7 = int_to_ptr.vmem [resolvable:$true] %s198_s7 }
  0x11   : > { %s2022_s9 = smov [#allocation7]   ;;  %s2819_s1 = sld [smem:[#allocation15_spill]] }
  0x12   : > { %s2817_s29 = scalar_select %p2108_p8, 1, 0 }
  0x13   : > { %p1695_p9 = pneg %p2108_p8  ;;  %s214_s10 = sshll.u32 %s2022_s9, 4  ;;  %s2123_s10 = int_to_ptr.vmem [resolvable:$true] %s214_s10 }
  0x15   : > { %p2119_p11 = pnand %p1695_p9, %p2809_p1 }
  0x17   : > { %s1831_s13 = scalar_lea.hbm %s2819_s1, 1024  ;;  %p2133_p13 = pneg %p2119_p11 }
  0x18   : > { %p1832_p12 = scmp.ne.s32.totalorder %s2819_s1, %s1831_s13  ;;  %p1838_p5 = scmp.lt.u32.totalorder %s1831_s13, %s2819_s1 }
  0x1a   : > { %p1834_p0 = pnand %p2133_p13, %p1832_p12 }
  0x1c   : > { %p1835_p3 = pneg %p1834_p0 }
  0x1e   : > { %p1840_p7 = pnand %p1838_p5, %p1835_p3 }
  0x20   : > { %1843 = shalt.err (!%p1840_p7)
}
  0x21   : > { %s1844_s19 = scalar_lea.vmem %s2112_s7, 1024  ;;  %p1852_p2 = scmp.lt.s32.totalorder %s2112_s7, %s2112_s7 }
  0x22   : > { %p1845_p9 = scmp.ne.s32.totalorder %s2112_s7, %s1844_s19  ;;  %p1853_p6 = scmp.lt.s32.totalorder %s1844_s19, %s1844_s19 }
  0x24   : > { %p1847_p10 = pnand %p1845_p9, %p2133_p13  ;;  %p1854_p12 = por %p1853_p6, %p1852_p2 }
  0x26   : > { %p1848_p1 = pneg %p1847_p10 }
  0x28   : > { %p1855_p0 = pnand %p1854_p12, %p1848_p1 }
  0x2a   : > { %1858 = shalt.err (!%p1855_p0)
}
  0x2b   : > { %s2810_s20 = smov 64   ;;  %s2811_s26 = smov 4  }
  0x2c   : > { %1698 = dma.hbm_to_vmem [thread:$0]  (!%p2119_p11), %s2819_s1, 1024, %s2112_s7, [#allocation6], %s2810_s20, %s2810_s20, %s2811_s26  }
  0x2d   : > { %s1859_s13 = scalar_lea.hbm %s2805_s3, 2048 }
  0x2e   : > { %p1860_p1 = scmp.ne.s32.totalorder %s2805_s3, %s1859_s13  ;;  %p1866_p10 = scmp.lt.u32.totalorder %s1859_s13, %s2805_s3 }
  0x30   : > { %p1862_p2 = pnand %p1860_p1, %p2133_p13 }
  0x32   : > { %p1863_p6 = pneg %p1862_p2 }
  0x34   : > { %p1868_p3 = pnand %p1866_p10, %p1863_p6 }
  0x36   : > { %1871 = shalt.err (!%p1868_p3)
}
  0x37   : > { %s1872_s7 = scalar_lea.vmem %s2123_s10, 2048  ;;  %p1880_p12 = scmp.lt.s32.totalorder %s2123_s10, %s2123_s10 }
  0x38   : > { %p1873_p5 = scmp.ne.s32.totalorder %s2123_s10, %s1872_s7  ;;  %p1881_p0 = scmp.lt.s32.totalorder %s1872_s7, %s1872_s7 }
  0x3a   : > { %p1875_p7 = pnand %p1873_p5, %p2133_p13  ;;  %p1882_p1 = por %p1881_p0, %p1880_p12 }
  0x3c   : > { %p1876_p9 = pneg %p1875_p7 }
  0x3e   : > { %p1883_p2 = pnand %p1882_p1, %p1876_p9 }
  0x40   : > { %1886 = shalt.err (!%p1883_p2)
}
  0x41   : > { %s2025_s19 = smov 128   ;;  %s2026_s30 = smov 8  }
  0x42   : > { %1701 = dma.hbm_to_vmem [thread:$0]  (!%p2119_p11), %s2805_s3, 2048, %s2123_s10, [#allocation6], %s2025_s19, %s2025_s19, %s2026_s30  }
  0x43   : > { %s2027_s12 = smov [#allocation8]   ;;  %s2181_s14 = sadd.s32 1, %s2019_s24  }
  0x44   : > { %s227_s13 = sshll.u32 %s2027_s12, 4  ;;  %s1887_s18 = scalar_lea.hbm %s2806_s4, 2048  ;;  %s228_s13 = int_to_ptr.vmem [resolvable:$true] %s227_s13 }
  0x45   : > { %p1888_p6 = scmp.ne.s32.totalorder %s2806_s4, %s1887_s18  ;;  %p1894_p5 = scmp.lt.u32.totalorder %s1887_s18, %s2806_s4 }
  0x47   : > { %p1890_p10 = pnand %p1888_p6, %p2133_p13 }
  0x49   : > { %p1891_p3 = pneg %p1890_p10 }
  0x4b   : > { %p1896_p7 = pnand %p1894_p5, %p1891_p3 }
  0x4d   : > { %1899 = shalt.err (!%p1896_p7)
}
  0x4e   : > { %s1900_s10 = scalar_lea.vmem %s228_s13, 2048  ;;  %p1908_p1 = scmp.lt.s32.totalorder %s228_s13, %s228_s13 }
  0x4f   : > { %p1901_p9 = scmp.ne.s32.totalorder %s228_s13, %s1900_s10  ;;  %p1909_p2 = scmp.lt.s32.totalorder %s1900_s10, %s1900_s10 }
  0x51   : > { %p1903_p12 = pnand %p1901_p9, %p2133_p13  ;;  %p1910_p4 = por %p1909_p2, %p1908_p1 }
  0x53   : > { %p1904_p0 = pneg %p1903_p12 }
  0x55   : > { %p1911_p8 = pnand %p1910_p4, %p1904_p0 }
  0x57   : > { %1914 = shalt.err (!%p1911_p8)
}
  0x58   : > { %1704 = dma.hbm_to_vmem [thread:$0]  (!%p2119_p11), %s2806_s4, 2048, %s228_s13, [#allocation9], %s2025_s19, %s2025_s19, %s2026_s30  }
  0x59   : > { %s28_s1 = ssub.s32 %s2019_s24, %s2181_s14  ;;  %s31_s16 = sadd.s32 1, %s2015_s23 }
  0x5a   : > { %p29_p4 = scmp.eq.s32.totalorder %s28_s1, 0  ;;  %p38_p8 = scmp.ne.s32.totalorder %s2015_s23, %s2011_s22 }
  0x5b   : > { %p39_p13 = scmp.eq.s32.totalorder %s2019_s24, 0  ;;  %p1716_p6 = scmp.lt.s32.totalorder %s2019_s24, 2 }
  0x5c   : > { %s2209_s8 = scalar_select %p29_p4, %s2015_s23, %s31_s16  }
  0x5d   : > { %p40_p10 = por %p39_p13, %p38_p8  ;;  %p2821_p3 = scmp.eq.s32.totalorder %s2089_s25, 1 }
  0x5e   : > { %s244_s11 = sand.u32 1, %s2015_s23   ;;  %s1548_s12 = smul.u32 1536, %s2019_s24 }
  0x5f   : > { %p2213_p5 = por %p2821_p3, %p38_p8  ;;  %s1676_s15 = smul.u32 96, %s244_s11 }
  0x60   : > { %p2219_p7 = pnand %p1716_p6, %p40_p10  ;;  %s2226_s13 = scalar_lea.hbm %s2802_s0, %s1548_s12 }
  0x61   : > { %s248_s18 = scalar_lea.vmem [#allocation2], %s1676_s15  ;;  %s2230_s10 = scalar_lea.sflag [#allocation3], %s244_s11 }
  0x62   : > { %s255_s7 = sshll.u32 %s248_s18, 4  ;;  %s1915_s20 = scalar_lea.hbm %s2226_s13, 1536  ;;  %s2228_s7 = int_to_ptr.vmem [resolvable:$true] %s255_s7 }
  0x63   : > { %p1916_p11 = scmp.ne.s32.totalorder %s2226_s13, %s1915_s20  ;;  %p1917_p9 = pneg %p2219_p7 }
  0x64   : > { %s1920_s16 = scalar_lea.hbm %s2802_s0, 3072  ;;  %p1921_p1 = scmp.lt.u32.totalorder %s2226_s13, %s2802_s0 }
  0x65   : > { %p1918_p12 = pnand %p1917_p9, %p1916_p11  ;;  %p1922_p2 = scmp.lt.u32.totalorder %s1920_s16, %s1915_s20 }
  0x66   : > { %p1924_p8 = scmp.lt.u32.totalorder %s1915_s20, %s2226_s13 }
  0x67   : > { %p1919_p0 = pneg %p1918_p12  ;;  %p1923_p4 = por %p1922_p2, %p1921_p1 }
  0x69   : > { %p1925_p13 = por %p1924_p8, %p1923_p4 }
  0x6b   : > { %p1926_p6 = pnand %p1925_p13, %p1919_p0 }
  0x6d   : > { %1929 = shalt.err (!%p1926_p6)
}
  0x6e   : > { %s1930_s11 = scalar_lea.vmem %s2228_s7, 1536  ;;  %s2028_s15 = smov [#allocation2]  }
  0x6f   : > { %p1931_p10 = scmp.ne.s32.totalorder %s2228_s7, %s1930_s11  ;;  %s1935_s30 = sshll.u32 %s2028_s15, 4  ;;  %s1936_s30 = int_to_ptr.vmem [resolvable:$false] %s1935_s30 }
  0x70   : > { %s1937_s18 = scalar_lea.vmem %s1936_s30, 3072  ;;  %p1938_p12 = scmp.lt.s32.totalorder %s2228_s7, %s1936_s30 }
  0x71   : > { %p1933_p3 = pnand %p1931_p10, %p1917_p9  ;;  %p1939_p1 = scmp.lt.s32.totalorder %s1937_s18, %s1930_s11 }
  0x73   : > { %p1934_p11 = pneg %p1933_p3  ;;  %p1940_p2 = por %p1939_p1, %p1938_p12 }
  0x75   : > { %p1941_p4 = pnand %p1940_p2, %p1934_p11 }
  0x77   : > { %1944 = shalt.err (!%p1941_p4)
}
  0x78   : > { %s2824_s20 = smov 4   ;;  %s2825_s9 = smov 64  }
  0x79   : > { %1708 = dma.hbm_to_vmem [thread:$0]  (!%p2219_p7), %s2226_s13, 1536, %s2228_s7, %s2230_s10, %s2825_s9, %s2825_s9, %s2824_s20  }
  0x7a   : > { %p2826_p9 = scmp.ne.s32.totalorder %s2817_s29, 0 }
  0x7b   : > { %s2264_s1 = sand.u32 (!%p2826_p9), 1, %s2011_s22   ;;  %p2827_p0 = scmp.ne.s32.totalorder (!%p2826_p9), %s2815_s27, 0 }
  0x7c   : > { %267 = sbr.rel (%p2826_p9) target bundleno = 736 (0x2e0), region = 44  ;;  %s270_s12 = scalar_lea.sflag (!%p2826_p9), [#allocation3], %s2264_s1 }
  0x7d   : > { %s1677_s16 = smul.u32 (!%p2826_p9), 96, %s2264_s1 }
  0x7f   : > { %s2268_s19 = scalar_lea.vmem (!%p2826_p9), [#allocation2], %s1677_s16 }
  0x83   : > { %1990 = dma.done.wait (%p2827_p0), %s270_s12, 1536  }
  0x84   : > { %1992 = vsyncadd (%p2827_p0), %s270_s12, 4294965760  ;;  %p2828_p7 = scmp.eq.s32.totalorder %s2089_s25, 0 }
  0x86   : > { %1994 = dma.done.wait (%p2828_p7), [#allocation6], 3072   ;;  %p2829_p8 = pmov %p2828_p7 }
  0x87   : > { %p2830_p13 = pmov %p2828_p7 }
  0x88   : > { %1996 = vsyncadd (%p2829_p8), [#allocation6], 4294964224 }
  0x89   : > { %1998 = dma.done.wait (%p2830_p13), [#allocation9], 2048   ;;  %p2831_p6 = pmov %p2828_p7 }
  0x8a   : > { %v2029_v0 = vmov 0   ;;  %v1763_v1 = vld [vmem:[#allocation5] sm:$0xff]   ;;  %v1764_v2 = vld [vmem:[#allocation5 + $0x8] sm:$0xff]   ;;  %v1765_v3 = vld [vmem:[#allocation5 + $0x10] sm:$0xff]   ;;  %s1678_s7 = smul.u32 384, %s2264_s1  ;;  %s2030_s16 = smov [#allocation10]  }
  0x8b   : > { %2000 = vsyncadd (%p2831_p6), [#allocation9], 4294965248  ;;  %817 = vmatprep.mubr.bf16.mxu1 %v2029_v0  ;;  %1572 = vmatprep.subr.bf16.mxu0 %v1763_v1  ;;  %v1766_v4 = vld [vmem:[#allocation5 + $0x18] sm:$0xff]   ;;  %v2284_v5 = vld [vmem:[%s2268_s19] sm:$0xf]  ;;  %s1551_s11 = smul.u32 6144, %s2089_s25 }
  0x8c   : > { %1573 = vmatpush3.bf16.msra.mxu0 %v1763_v1  ;;  %v2287_v6 = vld [vmem:[%s2268_s19 + $0x4] sm:$0xf]  ;;  %v357_v7 = vmax.bf16 %v2029_v0, %v2284_v5  ;;  %v1768_v12 = vld [vmem:[#allocation5 + $0x28] sm:$0xff]   ;;  %v1779_v18 = vld [vmem:[#allocation7 + $0x14] ss:$8 sps:$4 sm:$0xff]   ;;  %s2623_s10 = scalar_lea.vmem [#allocation10], %s1678_s7 }
  0x8d   : > { %1574 = vmatprep.subr.bf16.mxu0 %v1764_v2  ;;  %v358_v8 = vmax.bf16 %v2029_v0, %v2287_v6  ;;  %v1516_v9 = vcombine.low %v2284_v5, %v2287_v6  ;;  %v1767_v11 = vld [vmem:[#allocation5 + $0x20] sm:$0xff]   ;;  %v2296_v13 = vld [vmem:[%s2268_s19 + $0x48] sm:$0xf]  ;;  %v2299_v14 = vld [vmem:[%s2268_s19 + $0x4c] sm:$0xf]  ;;  %s1366_s15 = sshll.u32 %s2623_s10, 4  ;;  %s2752_s20 = scalar_lea.hbm %s2808_s6, %s1551_s11  ;;  %s2754_s15 = int_to_ptr.vmem [resolvable:$true] %s1366_s15 }
  0x8e   : > { %v1525_v15 = vcombine.low %v2296_v13, %v2299_v14  ;;  %v1773_v16 = vld [vmem:[#allocation7 + $0x4] ss:$8 sps:$4 sm:$0xff]   ;;  %v1775_v17 = vld [vmem:[#allocation7] ss:$8 sps:$4 sm:$0xff]   ;;  %v1781_v19 = vld [vmem:[#allocation7 + $0x10] ss:$8 sps:$4 sm:$0xff]  }
  0x8f   : > { %v1480_v10 = vcombine.low %v357_v7, %v358_v8  ;;  %785 = vmatprep.subr.bf16.mxu1 %v1773_v16  ;;  %v1769_v20 = vld [vmem:[#allocation5 + $0x30] sm:$0xff]   ;;  %v2304_v21 = vld [vmem:[%s2268_s19 + $0x8] sm:$0xf]  ;;  %v2307_v22 = vld [vmem:[%s2268_s19 + $0xc] sm:$0xf]  ;;  %s1352_s25 = scalar_lea.sflag [#allocation4], %s2264_s1 }
  0x90   : > { %1575 = vmatpush3.bf16.msra.mxu0 %v1764_v2  ;;  %786 = vmatpush1.bf16.msra.mxu1 %v1775_v17  ;;  %v1770_v23 = vld [vmem:[#allocation5 + $0x38] sm:$0xff]   ;;  %v2310_v24 = vld [vmem:[%s2268_s19 + $0x10] sm:$0xf]  ;;  %v1785_v25 = vld [vmem:[#allocation7 + $0x24] ss:$8 sps:$4 sm:$0xff]   ;;  %v359_v29 = vmax.bf16 %v2029_v0, %v2304_v21  ;;  %v360_v30 = vmax.bf16 %v2029_v0, %v2307_v22  ;;  %s1945_s9 = scalar_lea.vmem %s2754_s15, 6144 }
  0x91   : > { %1576 = vmatprep.subr.bf16.mxu0 %v1765_v3  ;;  %1588 = vmatprep.mubr.bf16.mxu0 %v1480_v10  ;;  %v2313_v26 = vld [vmem:[%s2268_s19 + $0x14] sm:$0xf]  ;;  %v1787_v27 = vld [vmem:[#allocation7 + $0x20] ss:$8 sps:$4 sm:$0xff]   ;;  %v361_v31 = vmax.bf16 %v2029_v0, %v2310_v24  ;;  %v2323_v33 = vld [vmem:[#allocation8 + $0x4] ss:$8 sps:$4 sm:$0xff]   ;;  %p1946_p10 = scmp.ne.s32.totalorder %s2754_s15, %s1945_s9 }
  0x92   : > { %787 = vmatprep.subr.bf16.mxu1 %v1779_v18  ;;  %v1791_v28 = vld [vmem:[#allocation7 + $0x34] ss:$8 sps:$4 sm:$0xff]   ;;  %v362_v32 = vmax.bf16 %v2029_v0, %v2313_v26  ;;  %v1793_v34 = vld [vmem:[#allocation7 + $0x30] ss:$8 sps:$4 sm:$0xff]   ;;  %v1797_v35 = vld [vmem:[#allocation7 + $0x44] ss:$8 sps:$4 sm:$0xff]   ;;  %v1481_v38 = vcombine.low %v359_v29, %v360_v30 }
  0x93   : > { %v2326_v36 = vld [vmem:[%s2268_s19 + $0x18] sm:$0xf]  ;;  %v2329_v37 = vld [vmem:[%s2268_s19 + $0x1c] sm:$0xf]  ;;  %v2332_v39 = vld [vmem:[%s2268_s19 + $0x20] sm:$0xf]  ;;  %p1947_p3 = pnand %p1946_p10, %p2213_p5 }
  0x94   : > { %1577 = vmatpush3.bf16.msra.mxu0 %v1765_v3  ;;  %788 = vmatpush1.bf16.msra.mxu1 %v1781_v19  ;;  %v2335_v40 = vld [vmem:[%s2268_s19 + $0x24] sm:$0xf]  ;;  %v2337_v41 = vld [vmem:[#allocation8] ss:$8 sps:$4 sm:$0xff]   ;;  %v2339_v42 = vld [vmem:[#allocation8 + $0x14] ss:$8 sps:$4 sm:$0xff]   ;;  %v1482_v43 = vcombine.low %v361_v31, %v362_v32  ;;  %v363_v46 = vmax.bf16 %v2029_v0, %v2326_v36  ;;  %v364_v47 = vmax.bf16 %v2029_v0, %v2329_v37 }
  0x95   : > { %1578 = vmatprep.subr.bf16.mxu0 %v1766_v4  ;;  %789 = vmatprep.subr.bf16.mxu1 %v1785_v25  ;;  %v1799_v44 = vld [vmem:[#allocation7 + $0x40] ss:$8 sps:$4 sm:$0xff]   ;;  %v1803_v45 = vld [vmem:[#allocation7 + $0x54] ss:$8 sps:$4 sm:$0xff]   ;;  %v365_v48 = vmax.bf16 %v2029_v0, %v2332_v39  ;;  %v366_v49 = vmax.bf16 %v2029_v0, %v2335_v40  ;;  %v2351_v50 = vld [vmem:[#allocation8 + $0x10] ss:$8 sps:$4 sm:$0xff]   ;;  %v375_v31 = vmax.bf16 %v2029_v0, %v2296_v13  ;;  %p1948_p11 = pneg %p1947_p3 }
  0x96   : > { %v2354_v51 = vld [vmem:[#allocation8 + $0x24] ss:$8 sps:$4 sm:$0xff]   ;;  %v1805_v52 = vld [vmem:[#allocation7 + $0x50] ss:$8 sps:$4 sm:$0xff]   ;;  %v1483_v53 = vcombine.low %v363_v46, %v364_v47  ;;  %v2357_v55 = vld [vmem:[%s2268_s19 + $0x28] sm:$0xf]  ;;  %v376_v32 = vmax.bf16 %v2029_v0, %v2299_v14  ;;  %v1520_v5 = vcombine.low %v2332_v39, %v2335_v40 }
  0x97   : > { %v1484_v54 = vcombine.low %v365_v48, %v366_v49  ;;  %v2360_v56 = vld [vmem:[%s2268_s19 + $0x2c] sm:$0xf]  ;;  %v2363_v57 = vld [vmem:[#allocation8 + $0x20] ss:$8 sps:$4 sm:$0xff]   ;;  %v2366_v58 = vld [vmem:[%s2268_s19 + $0x30] sm:$0xf]  ;;  %v367_v61 = vmax.bf16 %v2029_v0, %v2357_v55 }
  0x98   : > { %1579 = vmatpush3.bf16.msra.mxu0 %v1766_v4  ;;  %790 = vmatpush1.bf16.msra.mxu1 %v1787_v27  ;;  %v2369_v59 = vld [vmem:[%s2268_s19 + $0x34] sm:$0xf]  ;;  %v368_v62 = vmax.bf16 %v2029_v0, %v2360_v56  ;;  %v369_v63 = vmax.bf16 %v2029_v0, %v2366_v58  ;;  %v2383_v2 = vld [vmem:[#allocation8 + $0x30] ss:$8 sps:$4 sm:$0xff]   ;;  %v2386_v3 = vld [vmem:[#allocation8 + $0x44] ss:$8 sps:$4 sm:$0xff]   ;;  %v1521_v6 = vcombine.low %v2357_v55, %v2360_v56 }
  0x99   : > { %1580 = vmatprep.subr.bf16.mxu0 %v1767_v11  ;;  %791 = vmatprep.subr.bf16.mxu1 %v1791_v28  ;;  %v2372_v60 = vld [vmem:[#allocation8 + $0x34] ss:$8 sps:$4 sm:$0xff]   ;;  %v370_v1 = vmax.bf16 %v2029_v0, %v2369_v59  ;;  %v2389_v8 = vld [vmem:[%s2268_s19 + $0x38] sm:$0xf]  ;;  %v2401_v16 = vld [vmem:[%s2268_s19 + $0x44] sm:$0xf] }
  0x9a   : > { %v1485_v4 = vcombine.low %v367_v61, %v368_v62  ;;  %v2392_v10 = vld [vmem:[%s2268_s19 + $0x3c] sm:$0xf]  ;;  %v371_v18 = vmax.bf16 %v2029_v0, %v2389_v8  ;;  %v2415_v25 = vld [vmem:[#allocation8 + $0x50] ss:$8 sps:$4 sm:$0xff]   ;;  %v2423_v30 = vld [vmem:[%s2268_s19 + $0x54] sm:$0xf] }
  0x9b   : > { %v1486_v7 = vcombine.low %v369_v63, %v370_v1  ;;  %v2404_v17 = vld [vmem:[#allocation8 + $0x54] ss:$8 sps:$4 sm:$0xff]   ;;  %v372_v19 = vmax.bf16 %v2029_v0, %v2392_v10  ;;  %v2420_v29 = vld [vmem:[%s2268_s19 + $0x50] sm:$0xf]  ;;  %v1809_v49 = vld [vmem:[#allocation7 + $0x64] ss:$8 sps:$4 sm:$0xff]  }
  0x9c   : > { %1581 = vmatpush3.bf16.msra.mxu0 %v1767_v11  ;;  %792 = vmatpush1.bf16.msra.mxu1 %v1793_v34  ;;  %v2395_v11 = vld [vmem:[#allocation8 + $0x40] ss:$8 sps:$4 sm:$0xff]   ;;  %v377_v34 = vmax.bf16 %v2029_v0, %v2420_v29  ;;  %v1815_v61 = vld [vmem:[#allocation7 + $0x74] ss:$8 sps:$4 sm:$0xff]   ;;  %v1817_v63 = vld [vmem:[#allocation7 + $0x70] ss:$8 sps:$4 sm:$0xff]  }
  0x9d   : > { %1582 = vmatprep.subr.bf16.mxu0 %v1768_v12  ;;  %793 = vmatprep.subr.bf16.mxu1 %v1797_v35  ;;  %v1487_v27 = vcombine.low %v371_v18, %v372_v19  ;;  %v378_v35 = vmax.bf16 %v2029_v0, %v2423_v30  ;;  %v2450_v62 = vld [vmem:[#allocation8 + $0x74] ss:$8 sps:$4 sm:$0xff]   ;;  %v2452_v1 = vld [vmem:[#allocation8 + $0x70] ss:$8 sps:$4 sm:$0xff]   ;;  %s1949_s12 = sshll.u32 %s2030_s16, 4  ;;  %s1950_s12 = int_to_ptr.vmem [resolvable:$false] %s1949_s12 }
  0x9e   : > { %p1952_p12 = scmp.lt.s32.totalorder %s2754_s15, %s1950_s12 }
  0xa0   : > { %1583 = vmatpush3.bf16.msra.mxu0 %v1768_v12  ;;  %794 = vmatpush1.bf16.msra.mxu1 %v1799_v44  ;;  %v2398_v12 = vld [vmem:[%s2268_s19 + $0x40] sm:$0xf]  ;;  %v2434_v44 = vld [vmem:[%s2268_s19 + $0x58] sm:$0xf] }
  0xa1   : > { %1584 = vmatprep.subr.bf16.mxu0 %v1769_v20  ;;  %795 = vmatprep.subr.bf16.mxu1 %v1803_v45  ;;  %v2437_v45 = vld [vmem:[%s2268_s19 + $0x5c] sm:$0xf]  ;;  %v379_v46 = vmax.bf16 %v2029_v0, %v2434_v44  ;;  %s1951_s19 = scalar_lea.vmem %s1950_s12, 12288 }
  0xa2   : > { %v380_v47 = vmax.bf16 %v2029_v0, %v2437_v45  ;;  %v1527_v13 = vcombine.low %v2434_v44, %v2437_v45  ;;  %p1953_p1 = scmp.lt.s32.totalorder %s1951_s19, %s1945_s9 }
  0xa4   : > { %1585 = vmatpush3.bf16.msra.mxu0 %v1769_v20  ;;  %796 = vmatpush1.bf16.msra.mxu1 %v1805_v52  ;;  %v373_v20 = vmax.bf16 %v2029_v0, %v2398_v12  ;;  %v1491_v48 = vcombine.low %v379_v46, %v380_v47  ;;  %v2444_v52 = vld [vmem:[#allocation8 + $0x64] ss:$8 sps:$4 sm:$0xff]   ;;  %p1954_p2 = por %p1953_p1, %p1952_p12 }
  0xa5   : > { %1586 = vmatprep.subr.bf16.mxu0 %v1770_v23  ;;  %797 = vmatprep.subr.bf16.mxu1 %v1809_v49 }
  0xa6   : > { %p1955_p4 = pnand %p1954_p2, %p1948_p11 }
  0xa8   : > { %1587 = vmatpush3.bf16.msra.mxu0 %v1770_v23  ;;  %v374_v23 = vmax.bf16 %v2029_v0, %v2401_v16 }
  0xa9   : > { %1090 = vmatprep.subr.bf16.mxu0 %v2323_v33 }
  0xaa   : > { %v1488_v28 = vcombine.low %v373_v20, %v374_v23 }
  0xab   : > { %1589 = vmatmul.mubr.bf16.vlgmr.msra.gmra.mrb[0].mxu0 %v1481_v38  ;;  %v1489_v38 = vcombine.low %v375_v31, %v376_v32 }
  0xac   : > { %1592 = vmatprep.mubr.bf16.mxu0 %v1482_v43  ;;  %1091 = vmatpush1.bf16.msra.mxu0 %v2337_v41  ;;  %v1490_v43 = vcombine.low %v377_v34, %v378_v35 }
  0xad   : > { %1092 = vmatprep.subr.bf16.mxu0 %v2339_v42 }
  0xb0   : > { %1093 = vmatpush1.bf16.msra.mxu0 %v2351_v50 }
  0xb1   : > { %1094 = vmatprep.subr.bf16.mxu0 %v2354_v51 }
  0xb3   : > { %1593 = vmatmul.mubr.bf16.gmra.mrb[4].mxu0 %v1483_v53  ;;  %v1811_v53 = vld [vmem:[#allocation7 + $0x60] ss:$8 sps:$4 sm:$0xff]  }
  0xb4   : > { %1596 = vmatprep.mubr.bf16.mxu0 %v1484_v54  ;;  %1095 = vmatpush1.bf16.msra.mxu0 %v2363_v57  ;;  %v2446_v54 = vld [vmem:[#allocation8 + $0x60] ss:$8 sps:$4 sm:$0xff]  }
  0xb5   : > { %1096 = vmatprep.subr.bf16.mxu0 %v2372_v60  ;;  %798 = vmatpush1.bf16.msra.mxu1 %v1811_v53 }
  0xb6   : > { %799 = vmatprep.subr.bf16.mxu1 %v1815_v61 }
  0xb8   : > { %1097 = vmatpush1.bf16.msra.mxu0 %v2383_v2 }
  0xb9   : > { %1098 = vmatprep.subr.bf16.mxu0 %v2386_v3  ;;  %800 = vmatpush1.bf16.msra.mxu1 %v1817_v63 }
  0xba   : > { %1612 = vmatprep.subr.bf16.mxu1 %v2323_v33  ;;  %v1519_v33 = vcombine.low %v2326_v36, %v2329_v37 }
  0xbb   : > { %1597 = vmatmul.mubr.bf16.gmra.mrb[8].mxu0 %v1485_v4  ;;  %v1517_v4 = vcombine.low %v2304_v21, %v2307_v22  ;;  %v1523_v21 = vcombine.low %v2389_v8, %v2392_v10  ;;  %v1524_v22 = vcombine.low %v2398_v12, %v2401_v16 }
  0xbc   : > { %1600 = vmatprep.mubr.bf16.mxu0 %v1486_v7  ;;  %1099 = vmatpush1.bf16.msra.mxu0 %v2395_v11  ;;  %v1518_v7 = vcombine.low %v2310_v24, %v2313_v26  ;;  %v2487_v24 = vld [vmem:[%s2804_s2] ss:$0 sm:$0xff] }
  0xbd   : > { %1100 = vmatprep.subr.bf16.mxu0 %v2404_v17 }
  0xc0   : > { %1101 = vmatpush1.bf16.msra.mxu0 %v2415_v25 }
  0xc1   : > { %1102 = vmatprep.subr.bf16.mxu0 %v2444_v52 }
  0xc3   : > { %1601 = vmatmul.mubr.bf16.gmra.mrb[12].mxu0 %v1487_v27 }
  0xc4   : > { %1604 = vmatprep.mubr.bf16.mxu0 %v1488_v28  ;;  %1103 = vmatpush1.bf16.msra.mxu0 %v2446_v54 }
  0xc5   : > { %1104 = vmatprep.subr.bf16.mxu0 %v2450_v62 }
  0xc8   : > { %1105 = vmatpush1.bf16.msra.mxu0 %v2452_v1 }
  0xcb   : > { %1605 = vmatmul.mubr.bf16.gmra.mrb[16].mxu0 %v1489_v38 }
  0xcc   : > { %1608 = vmatprep.mubr.bf16.mxu0 %v1490_v43 }
  0xd3   : > { %1609 = vmatmul.mubr.bf16.gmra.mrb[20].mxu0 %v1491_v48 }
  0xd4   : > { %1122 = vmatprep.mubr.bf16.mxu0 %v2029_v0 }
  0xdb   : > { %1123 = vmatmul.mubr.bf16.vlgmr.msra.gmra.mrb[24].mxu0 %v1516_v9  ;;  %v1522_v9 = vcombine.low %v2366_v58, %v2369_v59 }
  0xdc   : > { %1132 = vmatprep.mubr.bf16.mxu0 %v2029_v0 }
  0xe3   : > { %1133 = vmatmul.mubr.bf16.gmra.mrb[28].mxu0 %v1517_v4 }
  0xe4   : > { %1142 = vmatprep.mubr.bf16.mxu0 %v2029_v0 }
  0xeb   : > { %1143 = vmatmul.mubr.bf16.gmra.mrb[32].mxu0 %v1518_v7 }
  0xec   : > { %1152 = vmatprep.mubr.bf16.mxu0 %v2029_v0 }
  0xf3   : > { %1153 = vmatmul.mubr.bf16.gmra.mrb[36].mxu0 %v1519_v33 }
  0xf4   : > { %1162 = vmatprep.mubr.bf16.mxu0 %v2029_v0 }
  0xfb   : > { %1163 = vmatmul.mubr.bf16.gmra.mrb[40].mxu0 %v1520_v5 }
  0xfc   : > { %1172 = vmatprep.mubr.bf16.mxu0 %v2029_v0 }
 0x103   : > { %1173 = vmatmul.mubr.bf16.gmra.mrb[44].mxu0 %v1521_v6 }
 0x104   : > { %1182 = vmatprep.mubr.bf16.mxu0 %v2029_v0 }
 0x10b   : > { %1183 = vmatmul.mubr.bf16.gmra.mrb[48].mxu0 %v1522_v9 }
 0x10c   : > { %1192 = vmatprep.mubr.bf16.mxu0 %v2029_v0 }
 0x113   : > { %1193 = vmatmul.mubr.bf16.gmra.mrb[52].mxu0 %v1523_v21 }
 0x114   : > { %1202 = vmatprep.mubr.bf16.mxu0 %v2029_v0 }
 0x11b   : > { %1203 = vmatmul.mubr.bf16.gmra.mrb[56].mxu0 %v1524_v22 }
 0x17e   : > { %v1590_v26 = vpop.f32.mrb[0].mxu0 }
 0x17f   : > { %v567_v36 = vadd.f32 %v1590_v26, %v2487_v24  ;;  %v558_v37 = vpop.f32.mrb[1].mxu0 }
 0x180   : > { %v559_v39 = vadd.f32 %v2487_v24, %v558_v37  ;;  %v1591_v40 = vpop.f32.mrb[2].mxu0 }
 0x181   : > { %v570_v55 = vadd.f32 %v1591_v40, %v2487_v24  ;;  %v561_v56 = vpop.f32.mrb[3].mxu0  ;;  %v655_v59 = vmax.f32 %v567_v36, 0.0 }
 0x182   : > { %v562_v58 = vadd.f32 %v2487_v24, %v561_v56  ;;  %v653_v10 = vmax.f32 %v559_v39, 0.0 }
 0x183   : > { %v656_v8 = vmax.f32 %v570_v55, 0.0 }
 0x184   : > { %v654_v12 = vmax.f32 %v562_v58, 0.0 }
 0x185   : > { %v678_v16 = vpack.c.bf16 %v656_v8, %v655_v59 }
 0x186   : > { %v677_v18 = vpack.c.bf16 %v654_v12, %v653_v10  ;;  %v1594_v19 = vpop.f32.mrb[4].mxu0 }
 0x187   : > { %v583_v20 = vadd.f32 %v1594_v19, %v2487_v24  ;;  %v574_v23 = vpop.f32.mrb[5].mxu0 }
 0x188   : > { %818 = vmatmul.mubr.bf16.vlgmr.msra.gmra.mrb[0].mxu1 %v677_v18  ;;  %v575_v27 = vadd.f32 %v2487_v24, %v574_v23  ;;  %v1595_v28 = vpop.f32.mrb[6].mxu0 }
 0x189   : > { %1620 = vmatpush1.bf16.msra.mxu1 %v2337_v41  ;;  %v659_v31 = vmax.f32 %v583_v20, 0.0  ;;  %v586_v32 = vadd.f32 %v1595_v28, %v2487_v24  ;;  %v577_v34 = vpop.f32.mrb[7].mxu0  ;;  %827 = vmatprep.mubr.bf16.mxu1 %v2029_v0 }
 0x18a   : > { %v657_v35 = vmax.f32 %v575_v27, 0.0  ;;  %v578_v38 = vadd.f32 %v2487_v24, %v577_v34  ;;  %1613 = vmatprep.subr.bf16.mxu1 %v2339_v42 }
 0x18b   : > { %v660_v43 = vmax.f32 %v586_v32, 0.0 }
 0x18c   : > { %v658_v46 = vmax.f32 %v578_v38, 0.0 }
 0x18d   : > { %v680_v47 = vpack.c.bf16 %v660_v43, %v659_v31  ;;  %1621 = vmatpush1.bf16.msra.mxu1 %v2351_v50 }
 0x18e   : > { %v679_v48 = vpack.c.bf16 %v658_v46, %v657_v35  ;;  %v1598_v49 = vpop.f32.mrb[8].mxu0  ;;  %1614 = vmatprep.subr.bf16.mxu1 %v2354_v51 }
 0x18f   : > { %v599_v41 = vadd.f32 %v1598_v49, %v2487_v24  ;;  %v590_v53 = vpop.f32.mrb[9].mxu0 }
 0x190   : > { %828 = vmatmul.mubr.bf16.gmra.mrb[4].mxu1 %v678_v16  ;;  %v591_v61 = vadd.f32 %v2487_v24, %v590_v53  ;;  %v1599_v63 = vpop.f32.mrb[10].mxu0 }
 0x191   : > { %837 = vmatprep.mubr.bf16.mxu1 %v2029_v0  ;;  %v663_v4 = vmax.f32 %v599_v41, 0.0  ;;  %v602_v42 = vadd.f32 %v1599_v63, %v2487_v24  ;;  %v593_v7 = vpop.f32.mrb[11].mxu0  ;;  %1622 = vmatpush1.bf16.msra.mxu1 %v2363_v57 }
 0x192   : > { %v661_v50 = vmax.f32 %v591_v61, 0.0  ;;  %v594_v33 = vadd.f32 %v2487_v24, %v593_v7  ;;  %1615 = vmatprep.subr.bf16.mxu1 %v2372_v60 }
 0x193   : > { %v664_v51 = vmax.f32 %v602_v42, 0.0 }
 0x194   : > { %v662_v5 = vmax.f32 %v594_v33, 0.0  ;;  %v1526_v33 = vcombine.low %v2420_v29, %v2423_v30 }
 0x195   : > { %v682_v6 = vpack.c.bf16 %v664_v51, %v663_v4  ;;  %1623 = vmatpush1.bf16.msra.mxu1 %v2383_v2 }
 0x196   : > { %v681_v9 = vpack.c.bf16 %v662_v5, %v661_v50  ;;  %v1602_v21 = vpop.f32.mrb[12].mxu0  ;;  %1616 = vmatprep.subr.bf16.mxu1 %v2386_v3 }
 0x197   : > { %v615_v22 = vadd.f32 %v1602_v21, %v2487_v24  ;;  %v606_v26 = vpop.f32.mrb[13].mxu0 }
 0x198   : > { %838 = vmatmul.mubr.bf16.gmra.mrb[8].mxu1 %v679_v48  ;;  %v607_v57 = vadd.f32 %v2487_v24, %v606_v26  ;;  %v1603_v36 = vpop.f32.mrb[14].mxu0 }
 0x199   : > { %847 = vmatprep.mubr.bf16.mxu1 %v2029_v0  ;;  %v667_v37 = vmax.f32 %v615_v22, 0.0  ;;  %v618_v60 = vadd.f32 %v1603_v36, %v2487_v24  ;;  %v609_v39 = vpop.f32.mrb[15].mxu0  ;;  %1624 = vmatpush1.bf16.msra.mxu1 %v2395_v11 }
 0x19a   : > { %v665_v2 = vmax.f32 %v607_v57, 0.0  ;;  %v610_v40 = vadd.f32 %v2487_v24, %v609_v39  ;;  %1617 = vmatprep.subr.bf16.mxu1 %v2404_v17 }
 0x19b   : > { %v668_v3 = vmax.f32 %v618_v60, 0.0 }
 0x19c   : > { %v666_v55 = vmax.f32 %v610_v40, 0.0 }
 0x19d   : > { %v684_v56 = vpack.c.bf16 %v668_v3, %v667_v37  ;;  %1625 = vmatpush1.bf16.msra.mxu1 %v2415_v25 }
 0x19e   : > { %v683_v58 = vpack.c.bf16 %v666_v55, %v665_v2  ;;  %v1606_v59 = vpop.f32.mrb[16].mxu0  ;;  %1618 = vmatprep.subr.bf16.mxu1 %v2444_v52 }
 0x19f   : > { %v631_v8 = vadd.f32 %v1606_v59, %v2487_v24  ;;  %v622_v10 = vpop.f32.mrb[17].mxu0 }
 0x1a0   : > { %848 = vmatmul.mubr.bf16.gmra.mrb[12].mxu1 %v680_v47  ;;  %v623_v11 = vadd.f32 %v2487_v24, %v622_v10  ;;  %v1607_v12 = vpop.f32.mrb[18].mxu0  ;;  %v1245_v10 = vlaneseq }
 0x1a1   : > { %857 = vmatprep.mubr.bf16.mxu1 %v2029_v0  ;;  %v671_v16 = vmax.f32 %v631_v8, 0.0  ;;  %v634_v17 = vadd.f32 %v1607_v12, %v2487_v24  ;;  %v625_v18 = vpop.f32.mrb[19].mxu0  ;;  %1626 = vmatpush1.bf16.msra.mxu1 %v2446_v54 }
 0x1a2   : > { %v669_v25 = vmax.f32 %v623_v11, 0.0  ;;  %v626_v19 = vadd.f32 %v2487_v24, %v625_v18  ;;  %1619 = vmatprep.subr.bf16.mxu1 %v2450_v62  ;;  %v1246_v11 = vshrl.u32 %v1245_v10, 7 }
 0x1a3   : > { %v672_v52 = vmax.f32 %v634_v17, 0.0 }
 0x1a4   : > { %v670_v20 = vmax.f32 %v626_v19, 0.0  ;;  %v1247_v12 = vsub.s32 0, %v1246_v11  ;;  %v1251_v17 = vsub.s32 1, %v1246_v11 }
 0x1a5   : > { %v686_v23 = vpack.c.bf16 %v672_v52, %v671_v16  ;;  %1627 = vmatpush1.bf16.msra.mxu1 %v2452_v1  ;;  %v1243_v16 = vld [vmem:[%s2807_s5] sm:$0x3] }
 0x1a6   : > { %v685_v27 = vpack.c.bf16 %v670_v20, %v669_v25  ;;  %v1610_v28 = vpop.f32.mrb[20].mxu0  ;;  %v2617_v18 = vrot.slane %v1243_v16, %v1247_v12  ;;  %v2619_v19 = vrot.slane %v1243_v16, %v1251_v17 }
 0x1a7   : > { %v647_v31 = vadd.f32 %v1610_v28, %v2487_v24  ;;  %v638_v32 = vpop.f32.mrb[21].mxu0 }
 0x1a8   : > { %858 = vmatmul.mubr.bf16.gmra.mrb[16].mxu1 %v681_v9  ;;  %v639_v34 = vadd.f32 %v2487_v24, %v638_v32  ;;  %v1611_v35 = vpop.f32.mrb[22].mxu0 }
 0x1a9   : > { %867 = vmatprep.mubr.bf16.mxu1 %v2029_v0  ;;  %v675_v54 = vmax.f32 %v647_v31, 0.0  ;;  %v650_v38 = vadd.f32 %v1611_v35, %v2487_v24  ;;  %v641_v62 = vpop.f32.mrb[23].mxu0 }
 0x1aa   : > { %v673_v43 = vmax.f32 %v639_v34, 0.0  ;;  %v642_v46 = vadd.f32 %v2487_v24, %v641_v62 }
 0x1ab   : > { %v676_v47 = vmax.f32 %v650_v38, 0.0 }
 0x1ac   : > { %v674_v1 = vmax.f32 %v642_v46, 0.0 }
 0x1ad   : > { %v688_v48 = vpack.c.bf16 %v676_v47, %v675_v54 }
 0x1ae   : > { %v687_v49 = vpack.c.bf16 %v674_v1, %v673_v43  ;;  %v1124_v24 = vpop.f32.mrb[24].mxu0 }
 0x1af   : > { %v1126_v41 = vpop.f32.mrb[25].mxu0 }
 0x1b0   : > { %868 = vmatmul.mubr.bf16.gmra.mrb[20].mxu1 %v682_v6  ;;  %v1128_v53 = vpop.f32.mrb[26].mxu0 }
 0x1b1   : > { %877 = vmatprep.mubr.bf16.mxu1 %v2029_v0  ;;  %v1130_v61 = vpop.f32.mrb[27].mxu0 }
 0x1b6   : > { %v2540_v63 = vpop.f32.mrb[28].mxu0 }
 0x1b7   : > { %v2542_v4 = vpop.f32.mrb[29].mxu0 }
 0x1b8   : > { %878 = vmatmul.mubr.bf16.gmra.mrb[24].mxu1 %v683_v58  ;;  %v2544_v42 = vpop.f32.mrb[30].mxu0 }
 0x1b9   : > { %887 = vmatprep.mubr.bf16.mxu1 %v2029_v0  ;;  %v2546_v7 = vpop.f32.mrb[31].mxu0 }
 0x1be   : > { %v2552_v50 = vpop.f32.mrb[32].mxu0 }
 0x1bf   : > { %v2556_v51 = vpop.f32.mrb[33].mxu0 }
 0x1c0   : > { %888 = vmatmul.mubr.bf16.gmra.mrb[28].mxu1 %v684_v56  ;;  %v2558_v5 = vpop.f32.mrb[34].mxu0 }
 0x1c1   : > { %897 = vmatprep.mubr.bf16.mxu1 %v2029_v0  ;;  %v2560_v6 = vpop.f32.mrb[35].mxu0 }
 0x1c6   : > { %v2563_v9 = vpop.f32.mrb[36].mxu0 }
 0x1c7   : > { %v2567_v14 = vpop.f32.mrb[37].mxu0 }
 0x1c8   : > { %898 = vmatmul.mubr.bf16.gmra.mrb[32].mxu1 %v685_v27 }
 0x1c9   : > { %907 = vmatprep.mubr.bf16.mxu1 %v2029_v0 }
 0x1d0   : > { %908 = vmatmul.mubr.bf16.gmra.mrb[36].mxu1 %v686_v23 }
 0x1d1   : > { %917 = vmatprep.mubr.bf16.mxu1 %v2029_v0 }
 0x1d8   : > { %918 = vmatmul.mubr.bf16.gmra.mrb[40].mxu1 %v687_v49 }
 0x1d9   : > { %927 = vmatprep.mubr.bf16.mxu1 %v2029_v0 }
 0x1e0   : > { %928 = vmatmul.mubr.bf16.gmra.mrb[44].mxu1 %v688_v48 }
 0x1e1   : > { %1212 = vmatprep.mubr.bf16.mxu1 %v2029_v0 }
 0x1e8   : > { %1213 = vmatmul.mubr.bf16.vlgmr.msra.gmra.mrb[36].mxu1 %v1525_v15  ;;  %v2569_v15 = vpop.f32.mrb[38].mxu0 }
 0x1e9   : > { %1222 = vmatprep.mubr.bf16.mxu1 %v2029_v0  ;;  %v2571_v21 = vpop.f32.mrb[39].mxu0 }
 0x1ea   : > { %v2573_v29 = vpop.f32.mrb[40].mxu0 }
 0x1eb   : > { %v2575_v30 = vpop.f32.mrb[41].mxu0 }
 0x1ec   : > { %v2577_v22 = vpop.f32.mrb[42].mxu0 }
 0x1ed   : > { %v2579_v26 = vpop.f32.mrb[43].mxu0 }
 0x1f0   : > { %1223 = vmatmul.mubr.bf16.gmra.mrb[40].mxu1 %v1526_v33 }
 0x1f1   : > { %1232 = vmatprep.mubr.bf16.mxu1 %v2029_v0  ;;  %v2581_v0 = vpop.f32.mrb[44].mxu0 }
 0x1f2   : > { %v2583_v57 = vpop.f32.mrb[45].mxu0 }
 0x1f3   : > { %v2585_v44 = vpop.f32.mrb[46].mxu0 }
 0x1f4   : > { %v2587_v45 = vpop.f32.mrb[47].mxu0 }
 0x1f5   : > { %v2589_v36 = vpop.f32.mrb[48].mxu0 }
 0x1f6   : > { %v2591_v37 = vpop.f32.mrb[49].mxu0 }
 0x1f7   : > { %v2593_v60 = vpop.f32.mrb[50].mxu0 }
 0x1f8   : > { %1233 = vmatmul.mubr.bf16.gmra.mrb[44].mxu1 %v1527_v13  ;;  %v2595_v39 = vpop.f32.mrb[51].mxu0 }
 0x1f9   : > { %v2597_v2 = vpop.f32.mrb[52].mxu0 }
 0x1fa   : > { %v2599_v40 = vpop.f32.mrb[53].mxu0 }
 0x1fb   : > { %v2601_v3 = vpop.f32.mrb[54].mxu0 }
 0x1fc   : > { %v2603_v55 = vpop.f32.mrb[55].mxu0 }
 0x1fd   : > { %v2605_v56 = vpop.f32.mrb[56].mxu0 }
 0x1fe   : > { %v2607_v58 = vpop.f32.mrb[57].mxu0 }
 0x1ff   : > { %v2609_v59 = vpop.f32.mrb[58].mxu0 }
 0x200   : > { %v2611_v8 = vpop.f32.mrb[59].mxu0 }
 0x25b   : > { %v819_v25 = vpop.f32.mrb[0].mxu1 }
 0x25c   : > { %v1125_v52 = vadd.f32 %v1124_v24, %v819_v25  ;;  %v821_v20 = vpop.f32.mrb[1].mxu1 }
 0x25d   : > { %v1127_v23 = vadd.f32 %v1126_v41, %v821_v20  ;;  %v823_v27 = vpop.f32.mrb[2].mxu1 }
 0x25e   : > { %v1255_v28 = vadd.f32 %v2617_v18, %v1125_v52  ;;  %v1129_v31 = vadd.f32 %v1128_v53, %v823_v27  ;;  %v825_v32 = vpop.f32.mrb[3].mxu1 }
 0x25f   : > { %v1256_v34 = vadd.f32 %v2619_v19, %v1127_v23  ;;  %v1131_v35 = vadd.f32 %v1130_v61, %v825_v32 }
 0x260   : > { %1303 = vst [vmem:[%s2623_s10] sm:$0xff] %v1255_v28  ;;  %v1257_v54 = vadd.f32 %v2617_v18, %v1129_v31 }
 0x261   : > { %1304 = vst [vmem:[%s2623_s10 + $0x8] sm:$0xff] %v1256_v34  ;;  %v1258_v38 = vadd.f32 %v2619_v19, %v1131_v35 }
 0x262   : > { %1305 = vst [vmem:[%s2623_s10 + $0x10] sm:$0xff] %v1257_v54 }
 0x263   : > { %1306 = vst [vmem:[%s2623_s10 + $0x18] sm:$0xff] %v1258_v38  ;;  %v829_v62 = vpop.f32.mrb[4].mxu1 }
 0x264   : > { %v1135_v43 = vadd.f32 %v2540_v63, %v829_v62  ;;  %v831_v46 = vpop.f32.mrb[5].mxu1 }
 0x265   : > { %v1137_v47 = vadd.f32 %v2542_v4, %v831_v46  ;;  %v833_v1 = vpop.f32.mrb[6].mxu1 }
 0x266   : > { %v1259_v48 = vadd.f32 %v2617_v18, %v1135_v43  ;;  %v1139_v49 = vadd.f32 %v2544_v42, %v833_v1  ;;  %v835_v24 = vpop.f32.mrb[7].mxu1 }
 0x267   : > { %v1260_v41 = vadd.f32 %v2619_v19, %v1137_v47  ;;  %v1141_v53 = vadd.f32 %v2546_v7, %v835_v24 }
 0x268   : > { %1307 = vst [vmem:[%s2623_s10 + $0x20] sm:$0xff] %v1259_v48  ;;  %v1261_v61 = vadd.f32 %v2617_v18, %v1139_v49 }
 0x269   : > { %1308 = vst [vmem:[%s2623_s10 + $0x28] sm:$0xff] %v1260_v41  ;;  %v1262_v63 = vadd.f32 %v2619_v19, %v1141_v53 }
 0x26a   : > { %1309 = vst [vmem:[%s2623_s10 + $0x30] sm:$0xff] %v1261_v61 }
 0x26b   : > { %1310 = vst [vmem:[%s2623_s10 + $0x38] sm:$0xff] %v1262_v63  ;;  %v839_v4 = vpop.f32.mrb[8].mxu1 }
 0x26c   : > { %v1145_v42 = vadd.f32 %v2552_v50, %v839_v4  ;;  %v841_v33 = vpop.f32.mrb[9].mxu1 }
 0x26d   : > { %v1147_v13 = vadd.f32 %v2556_v51, %v841_v33  ;;  %v843_v10 = vpop.f32.mrb[10].mxu1 }
 0x26e   : > { %v1263_v7 = vadd.f32 %v2617_v18, %v1145_v42  ;;  %v1149_v11 = vadd.f32 %v2558_v5, %v843_v10  ;;  %v845_v12 = vpop.f32.mrb[11].mxu1 }
 0x26f   : > { %v1264_v16 = vadd.f32 %v2619_v19, %v1147_v13  ;;  %v1151_v17 = vadd.f32 %v2560_v6, %v845_v12 }
 0x270   : > { %1311 = vst [vmem:[%s2623_s10 + $0x40] sm:$0xff] %v1263_v7  ;;  %v1265_v25 = vadd.f32 %v2617_v18, %v1149_v11 }
 0x271   : > { %1312 = vst [vmem:[%s2623_s10 + $0x48] sm:$0xff] %v1264_v16  ;;  %v1266_v50 = vadd.f32 %v2619_v19, %v1151_v17 }
 0x272   : > { %1313 = vst [vmem:[%s2623_s10 + $0x50] sm:$0xff] %v1265_v25 }
 0x273   : > { %1314 = vst [vmem:[%s2623_s10 + $0x58] sm:$0xff] %v1266_v50  ;;  %v849_v51 = vpop.f32.mrb[12].mxu1 }
 0x274   : > { %v1155_v5 = vadd.f32 %v2563_v9, %v849_v51  ;;  %v851_v52 = vpop.f32.mrb[13].mxu1 }
 0x275   : > { %v1157_v20 = vadd.f32 %v2567_v14, %v851_v52  ;;  %v853_v23 = vpop.f32.mrb[14].mxu1 }
 0x276   : > { %v1267_v6 = vadd.f32 %v2617_v18, %v1155_v5  ;;  %v1159_v27 = vadd.f32 %v2569_v15, %v853_v23  ;;  %v855_v28 = vpop.f32.mrb[15].mxu1 }
 0x277   : > { %v1268_v31 = vadd.f32 %v2619_v19, %v1157_v20  ;;  %v1161_v32 = vadd.f32 %v2571_v21, %v855_v28 }
 0x278   : > { %1315 = vst [vmem:[%s2623_s10 + $0x60] sm:$0xff] %v1267_v6  ;;  %v1269_v34 = vadd.f32 %v2617_v18, %v1159_v27 }
 0x279   : > { %1316 = vst [vmem:[%s2623_s10 + $0x68] sm:$0xff] %v1268_v31  ;;  %v1270_v9 = vadd.f32 %v2619_v19, %v1161_v32 }
 0x27a   : > { %1317 = vst [vmem:[%s2623_s10 + $0x70] sm:$0xff] %v1269_v34 }
 0x27b   : > { %1318 = vst [vmem:[%s2623_s10 + $0x78] sm:$0xff] %v1270_v9  ;;  %v859_v14 = vpop.f32.mrb[16].mxu1 }
 0x27c   : > { %v1165_v15 = vadd.f32 %v2573_v29, %v859_v14  ;;  %v861_v35 = vpop.f32.mrb[17].mxu1 }
 0x27d   : > { %v1167_v54 = vadd.f32 %v2575_v30, %v861_v35  ;;  %v863_v38 = vpop.f32.mrb[18].mxu1 }
 0x27e   : > { %v1271_v21 = vadd.f32 %v2617_v18, %v1165_v15  ;;  %v1169_v62 = vadd.f32 %v2577_v22, %v863_v38  ;;  %v865_v43 = vpop.f32.mrb[19].mxu1 }
 0x27f   : > { %v1272_v46 = vadd.f32 %v2619_v19, %v1167_v54  ;;  %v1171_v47 = vadd.f32 %v2579_v26, %v865_v43 }
 0x280   : > { %1319 = vst [vmem:[%s2623_s10 + $0x80] sm:$0xff] %v1271_v21  ;;  %v1273_v1 = vadd.f32 %v2617_v18, %v1169_v62 }
 0x281   : > { %1320 = vst [vmem:[%s2623_s10 + $0x88] sm:$0xff] %v1272_v46  ;;  %v1274_v29 = vadd.f32 %v2619_v19, %v1171_v47 }
 0x282   : > { %1321 = vst [vmem:[%s2623_s10 + $0x90] sm:$0xff] %v1273_v1 }
 0x283   : > { %1322 = vst [vmem:[%s2623_s10 + $0x98] sm:$0xff] %v1274_v29  ;;  %v869_v30 = vpop.f32.mrb[20].mxu1 }
 0x284   : > { %v1175_v22 = vadd.f32 %v2581_v0, %v869_v30  ;;  %v871_v48 = vpop.f32.mrb[21].mxu1 }
 0x285   : > { %v1177_v49 = vadd.f32 %v2583_v57, %v871_v48  ;;  %v873_v24 = vpop.f32.mrb[22].mxu1 }
 0x286   : > { %v1275_v26 = vadd.f32 %v2617_v18, %v1175_v22  ;;  %v1179_v41 = vadd.f32 %v2585_v44, %v873_v24  ;;  %v875_v53 = vpop.f32.mrb[23].mxu1 }
 0x287   : > { %v1276_v61 = vadd.f32 %v2619_v19, %v1177_v49  ;;  %v1181_v63 = vadd.f32 %v2587_v45, %v875_v53 }
 0x288   : > { %1323 = vst [vmem:[%s2623_s10 + $0xa0] sm:$0xff] %v1275_v26  ;;  %v1277_v4 = vadd.f32 %v2617_v18, %v1179_v41 }
 0x289   : > { %1324 = vst [vmem:[%s2623_s10 + $0xa8] sm:$0xff] %v1276_v61  ;;  %v1278_v0 = vadd.f32 %v2619_v19, %v1181_v63 }
 0x28a   : > { %1325 = vst [vmem:[%s2623_s10 + $0xb0] sm:$0xff] %v1277_v4 }
 0x28b   : > { %1326 = vst [vmem:[%s2623_s10 + $0xb8] sm:$0xff] %v1278_v0  ;;  %v879_v57 = vpop.f32.mrb[24].mxu1 }
 0x28c   : > { %v1185_v44 = vadd.f32 %v2589_v36, %v879_v57  ;;  %v881_v42 = vpop.f32.mrb[25].mxu1 }
 0x28d   : > { %v1187_v33 = vadd.f32 %v2591_v37, %v881_v42  ;;  %v883_v13 = vpop.f32.mrb[26].mxu1 }
 0x28e   : > { %v1279_v45 = vadd.f32 %v2617_v18, %v1185_v44  ;;  %v1189_v10 = vadd.f32 %v2593_v60, %v883_v13  ;;  %v885_v7 = vpop.f32.mrb[27].mxu1 }
 0x28f   : > { %v1280_v11 = vadd.f32 %v2619_v19, %v1187_v33  ;;  %v1191_v12 = vadd.f32 %v2595_v39, %v885_v7 }
 0x290   : > { %1327 = vst [vmem:[%s2623_s10 + $0xc0] sm:$0xff] %v1279_v45  ;;  %v1281_v16 = vadd.f32 %v2617_v18, %v1189_v10 }
 0x291   : > { %1328 = vst [vmem:[%s2623_s10 + $0xc8] sm:$0xff] %v1280_v11  ;;  %v1282_v36 = vadd.f32 %v2619_v19, %v1191_v12 }
 0x292   : > { %1329 = vst [vmem:[%s2623_s10 + $0xd0] sm:$0xff] %v1281_v16 }
 0x293   : > { %1330 = vst [vmem:[%s2623_s10 + $0xd8] sm:$0xff] %v1282_v36  ;;  %v889_v37 = vpop.f32.mrb[28].mxu1 }
 0x294   : > { %v1195_v60 = vadd.f32 %v2597_v2, %v889_v37  ;;  %v891_v17 = vpop.f32.mrb[29].mxu1 }
 0x295   : > { %v1197_v25 = vadd.f32 %v2599_v40, %v891_v17  ;;  %v893_v50 = vpop.f32.mrb[30].mxu1 }
 0x296   : > { %v1283_v39 = vadd.f32 %v2617_v18, %v1195_v60  ;;  %v1199_v51 = vadd.f32 %v2601_v3, %v893_v50  ;;  %v895_v5 = vpop.f32.mrb[31].mxu1 }
 0x297   : > { %v1284_v52 = vadd.f32 %v2619_v19, %v1197_v25  ;;  %v1201_v20 = vadd.f32 %v2603_v55, %v895_v5 }
 0x298   : > { %1331 = vst [vmem:[%s2623_s10 + $0xe0] sm:$0xff] %v1283_v39  ;;  %v1285_v23 = vadd.f32 %v2617_v18, %v1199_v51 }
 0x299   : > { %1332 = vst [vmem:[%s2623_s10 + $0xe8] sm:$0xff] %v1284_v52  ;;  %v1286_v2 = vadd.f32 %v2619_v19, %v1201_v20 }
 0x29a   : > { %1333 = vst [vmem:[%s2623_s10 + $0xf0] sm:$0xff] %v1285_v23 }
 0x29b   : > { %1334 = vst [vmem:[%s2623_s10 + $0xf8] sm:$0xff] %v1286_v2  ;;  %v899_v40 = vpop.f32.mrb[32].mxu1 }
 0x29c   : > { %v1205_v3 = vadd.f32 %v2605_v56, %v899_v40  ;;  %v901_v6 = vpop.f32.mrb[33].mxu1 }
 0x29d   : > { %v1207_v27 = vadd.f32 %v2607_v58, %v901_v6  ;;  %v903_v28 = vpop.f32.mrb[34].mxu1 }
 0x29e   : > { %v1287_v55 = vadd.f32 %v2617_v18, %v1205_v3  ;;  %v1209_v31 = vadd.f32 %v2609_v59, %v903_v28  ;;  %v905_v32 = vpop.f32.mrb[35].mxu1 }
 0x29f   : > { %v1288_v34 = vadd.f32 %v2619_v19, %v1207_v27  ;;  %v1211_v9 = vadd.f32 %v2611_v8, %v905_v32 }
 0x2a0   : > { %1335 = vst [vmem:[%s2623_s10 + $0x100] sm:$0xff] %v1287_v55  ;;  %v1289_v14 = vadd.f32 %v2617_v18, %v1209_v31 }
 0x2a1   : > { %1336 = vst [vmem:[%s2623_s10 + $0x108] sm:$0xff] %v1288_v34  ;;  %v1290_v56 = vadd.f32 %v2619_v19, %v1211_v9 }
 0x2a2   : > { %1337 = vst [vmem:[%s2623_s10 + $0x110] sm:$0xff] %v1289_v14 }
 0x2a3   : > { %1338 = vst [vmem:[%s2623_s10 + $0x118] sm:$0xff] %v1290_v56 }
 0x2bb   : > { %v1214_v58 = vpop.f32.mrb[36].mxu1 }
 0x2bc   : > { %v1291_v15 = vadd.f32 %v2617_v18, %v1214_v58  ;;  %v1216_v59 = vpop.f32.mrb[37].mxu1 }
 0x2bd   : > { %v1292_v35 = vadd.f32 %v2619_v19, %v1216_v59  ;;  %v1218_v54 = vpop.f32.mrb[38].mxu1 }
 0x2be   : > { %1339 = vst [vmem:[%s2623_s10 + $0x120] sm:$0xff] %v1291_v15  ;;  %v1293_v8 = vadd.f32 %v2617_v18, %v1218_v54  ;;  %v1220_v38 = vpop.f32.mrb[39].mxu1 }
 0x2bf   : > { %1340 = vst [vmem:[%s2623_s10 + $0x128] sm:$0xff] %v1292_v35  ;;  %v1294_v21 = vadd.f32 %v2619_v19, %v1220_v38 }
 0x2c0   : > { %1341 = vst [vmem:[%s2623_s10 + $0x130] sm:$0xff] %v1293_v8 }
 0x2c1   : > { %1342 = vst [vmem:[%s2623_s10 + $0x138] sm:$0xff] %v1294_v21 }
 0x2c3   : > { %v1224_v62 = vpop.f32.mrb[40].mxu1 }
 0x2c4   : > { %v1295_v43 = vadd.f32 %v2617_v18, %v1224_v62  ;;  %v1226_v46 = vpop.f32.mrb[41].mxu1 }
 0x2c5   : > { %v1296_v47 = vadd.f32 %v2619_v19, %v1226_v46  ;;  %v1228_v1 = vpop.f32.mrb[42].mxu1 }
 0x2c6   : > { %1343 = vst [vmem:[%s2623_s10 + $0x140] sm:$0xff] %v1295_v43  ;;  %v1297_v29 = vadd.f32 %v2617_v18, %v1228_v1  ;;  %v1230_v30 = vpop.f32.mrb[43].mxu1 }
 0x2c7   : > { %1344 = vst [vmem:[%s2623_s10 + $0x148] sm:$0xff] %v1296_v47  ;;  %v1298_v22 = vadd.f32 %v2619_v19, %v1230_v30 }
 0x2c8   : > { %1345 = vst [vmem:[%s2623_s10 + $0x150] sm:$0xff] %v1297_v29 }
 0x2c9   : > { %1346 = vst [vmem:[%s2623_s10 + $0x158] sm:$0xff] %v1298_v22 }
 0x2cb   : > { %v1234_v48 = vpop.f32.mrb[44].mxu1 }
 0x2cc   : > { %v1299_v49 = vadd.f32 %v2617_v18, %v1234_v48  ;;  %v1236_v24 = vpop.f32.mrb[45].mxu1 }
 0x2cd   : > { %v1300_v26 = vadd.f32 %v2619_v19, %v1236_v24  ;;  %v1238_v41 = vpop.f32.mrb[46].mxu1 }
 0x2ce   : > { %1347 = vst [vmem:[%s2623_s10 + $0x160] sm:$0xff] %v1299_v49  ;;  %v1301_v53 = vadd.f32 %v2617_v18, %v1238_v41  ;;  %v1240_v61 = vpop.f32.mrb[47].mxu1 }
 0x2cf   : > { %1348 = vst [vmem:[%s2623_s10 + $0x168] sm:$0xff] %v1300_v26  ;;  %v1302_v63 = vadd.f32 %v2619_v19, %v1240_v61 }
 0x2d0   : > { %1349 = vst [vmem:[%s2623_s10 + $0x170] sm:$0xff] %v1301_v53 }
 0x2d1   : > { %1350 = vst [vmem:[%s2623_s10 + $0x178] sm:$0xff] %v1302_v63 }
 0x2d2   : > { %1958 = shalt.err (!%p1955_p4)
}
 0x2d3   : > { %s1959_s27 = scalar_lea.hbm %s2752_s20, 6144  ;;  %s1963_s13 = scalar_lea.hbm %s2808_s6, 12288 }
 0x2d4   : > { %p1960_p9 = scmp.ne.s32.totalorder %s2752_s20, %s1959_s27  ;;  %p1964_p8 = scmp.lt.u32.totalorder %s2752_s20, %s2808_s6 }
 0x2d5   : > { %p1965_p13 = scmp.lt.u32.totalorder %s1963_s13, %s1959_s27  ;;  %p1967_p10 = scmp.lt.u32.totalorder %s1959_s27, %s2752_s20 }
 0x2d6   : > { %p1961_p0 = pnand %p1960_p9, %p2213_p5 }
 0x2d7   : > { %p1966_p6 = por %p1965_p13, %p1964_p8 }
 0x2d8   : > { %p1962_p7 = pneg %p1961_p0 }
 0x2d9   : > { %p1968_p3 = por %p1967_p10, %p1966_p6 }
 0x2db   : > { %p1969_p11 = pnand %p1968_p3, %p1962_p7 }
 0x2dd   : > { %1972 = shalt.err (!%p1969_p11)
}
 0x2de   : > { %s2031_s11 = smov 256   ;;  %s2032_s30 = smov 16  }
 0x2df   : > { %1693 = dma.vmem_to_hbm [thread:$0]  (%p2213_p5), %s2754_s15, 6144, %s2752_s20, %s1352_s25, %s2031_s11, %s2031_s11, %s2032_s30  }
 0x2e0 PF: > { %s1381_s18 = sand.u32 1, %s2007_s21   ;;  %p2832_p12 = scmp.ne.s32.totalorder %s2816_s28, 0 }
 0x2e1   : > { %p2833_p1 = scmp.ge.s32.totalorder %s2019_s24, 2  ;;  %s1382_s9 = scalar_lea.sflag [#allocation4], %s1381_s18 }
 0x2e3   : > { %p1710_p2 = pnand %p2833_p1, %p2832_p12 }
 0x2e5   : > { %2002 = dma.done.wait (!%p1710_p2), %s1382_s9, 6144  }
 0x2e6   : > { %2004 = vsyncadd (!%p1710_p2), %s1382_s9, 4294961152  ;;  %p21_p4 = scmp.ge.s32.totalorder %s2181_s14, 4   ;;  %s2834_s21 = smov %s2011_s22 }
 0x2e7   : > { %s2835_s22 = smov %s2015_s23  ;;  %s2836_s23 = smov %s2209_s8 }
 0x2e8   : > { %s2837_s24 = smov %s2181_s14  ;;  %23 = sbr.rel (!%p21_p4) target bundleno = 9 (0x9), region = 101 }
 0x2ef   :  { %1387 = vsyncpa [#allocation3], 1 }
 0x2f0   :  { %1389 = vsyncpa [#allocation3 + $0x1], 1 }
 0x2f1   :  { %1390 = vsyncpa [#allocation6], 1 }
 0x2f2   :  { %1391 = vsyncpa [#allocation9], 1 }
 0x2f3   :  { %1392 = vsyncpa [#allocation4], 1 }
 0x2f4   :  { %1394 = vsyncpa [#allocation4 + $0x1], 1 }

// kernel: tpu_custom_call.1
= control target key start
LH: loop header
LB: loop body
LE: loop exit
PB: predicated region body
PF: predicated region fallthrough
CT: control target
= control target key end

     0   :  { %s2802_s0 = inlined_call_operand.hbm [shape: bf16[384,128], index: 0, kind: input, shape index: {}]   ;;  %s2803_s1 = inlined_call_operand.hbm [shape: bf16[128,128], index: 1, kind: input, shape index: {}]   ;;  %s2804_s2 = inlined_call_operand.vmem [shape: f32[1,128], index: 2, kind: input, shape index: {}]   ;;  %s2805_s3 = inlined_call_operand.hbm [shape: bf16[128,256], index: 3, kind: input, shape index: {}]   ;;  %s2806_s4 = inlined_call_operand.hbm [shape: bf16[128,256], index: 4, kind: input, shape index: {}]   ;;  %s2807_s5 = inlined_call_operand.vmem [shape: f32[1,256], index: 5, kind: input, shape index: {}]   ;;  %s2808_s6 = inlined_call_operand.hbm [shape: f32[384,256], index: 6, kind: output, shape index: {}]  }
   0x1   :  { %2814 = sst [smem:[#allocation15_spill]] %s2803_s1 }
   0x2   :  { %11 = vsyncpa [#allocation3], 0 }
   0x3   :  { %13 = vsyncpa [#allocation3 + $0x1], 0 }
   0x4   :  { %14 = vsyncpa [#allocation6], 0 }
   0x5   :  { %15 = vsyncpa [#allocation9], 0 }
   0x6   :  { %16 = vsyncpa [#allocation4], 0 }
   0x7   :  { %18 = vsyncpa [#allocation4 + $0x1], 0  ;;  %s2068_s21 = smov 0   ;;  %s2070_s22 = smov 0  }
   0x8   :  { %s2072_s23 = smov 0   ;;  %s2074_s24 = smov 0  }
   0x9 LB: > { %s2089_s25 = sadd.s32 4294967295, %s2019_s24   ;;  %s1468_s26 = sadd.s32 4294967294, %s2019_s24   ;;  %s2019_s24 = sphi %s2074_s24, %s2837_s24   ;;  %s2015_s23 = sphi %s2072_s23, %s2836_s23   ;;  %s2011_s22 = sphi %s2070_s22, %s2835_s22   ;;  %s2007_s21 = sphi %s2068_s21, %s2834_s21  }
   0xa   : > { %p44_p0 = scmp.ne.s32.totalorder %s2011_s22, %s2007_s21  ;;  %p2809_p1 = scmp.eq.s32.totalorder %s2089_s25, 0 }
   0xb   : > { %p179_p3 = scmp.eq.s32.totalorder %s1468_s26, 1  ;;  %p1469_p5 = scmp.ge.s32.totalorder %s2019_s24, 1 }
   0xc   : > { %p2098_p4 = por %p2809_p1, %p44_p0  ;;  %p186_p7 = scmp.lt.s32.totalorder %s2019_s24, 3 }
   0xd   : > { %p2103_p6 = por %p179_p3, %p44_p0  ;;  %s2021_s30 = smov [#allocation5]  }
   0xe   : > { %s2815_s27 = scalar_select %p2098_p4, 1, 0 }
   0xf   : > { %s2816_s28 = scalar_select %p2103_p6, 1, 0 }
  0x10   : > { %p2108_p8 = pnand %p1469_p5, %p186_p7  ;;  %s198_s7 = sshll.u32 %s2021_s30, 4  ;;  %s2112_s7 = int_to_ptr.vmem [resolvable:$true] %s198_s7 }
  0x11   : > { %s2022_s9 = smov [#allocation7]   ;;  %s2819_s1 = sld [smem:[#allocation15_spill]] }
  0x12   : > { %s2817_s29 = scalar_select %p2108_p8, 1, 0 }
  0x13   : > { %p1695_p9 = pneg %p2108_p8  ;;  %s214_s10 = sshll.u32 %s2022_s9, 4  ;;  %s2123_s10 = int_to_ptr.vmem [resolvable:$true] %s214_s10 }
  0x15   : > { %p2119_p11 = pnand %p1695_p9, %p2809_p1 }
  0x17   : > { %s1831_s13 = scalar_lea.hbm %s2819_s1, 1024  ;;  %p2133_p13 = pneg %p2119_p11 }
  0x18   : > { %p1832_p12 = scmp.ne.s32.totalorder %s2819_s1, %s1831_s13  ;;  %p1838_p5 = scmp.lt.u32.totalorder %s1831_s13, %s2819_s1 }
  0x1a   : > { %p1834_p0 = pnand %p2133_p13, %p1832_p12 }
  0x1c   : > { %p1835_p3 = pneg %p1834_p0 }
  0x1e   : > { %p1840_p7 = pnand %p1838_p5, %p1835_p3 }
  0x20   : > { %1843 = shalt.err (!%p1840_p7)
}
  0x21   : > { %s1844_s19 = scalar_lea.vmem %s2112_s7, 1024  ;;  %p1852_p2 = scmp.lt.s32.totalorder %s2112_s7, %s2112_s7 }
  0x22   : > { %p1845_p9 = scmp.ne.s32.totalorder %s2112_s7, %s1844_s19  ;;  %p1853_p6 = scmp.lt.s32.totalorder %s1844_s19, %s1844_s19 }
  0x24   : > { %p1847_p10 = pnand %p1845_p9, %p2133_p13  ;;  %p1854_p12 = por %p1853_p6, %p1852_p2 }
  0x26   : > { %p1848_p1 = pneg %p1847_p10 }
  0x28   : > { %p1855_p0 = pnand %p1854_p12, %p1848_p1 }
  0x2a   : > { %1858 = shalt.err (!%p1855_p0)
}
  0x2b   : > { %s2810_s20 = smov 64   ;;  %s2811_s26 = smov 4  }
  0x2c   : > { %1698 = dma.hbm_to_vmem [thread:$0]  (!%p2119_p11), %s2819_s1, 1024, %s2112_s7, [#allocation6], %s2810_s20, %s2810_s20, %s2811_s26  }
  0x2d   : > { %s1859_s13 = scalar_lea.hbm %s2805_s3, 2048 }
  0x2e   : > { %p1860_p1 = scmp.ne.s32.totalorder %s2805_s3, %s1859_s13  ;;  %p1866_p10 = scmp.lt.u32.totalorder %s1859_s13, %s2805_s3 }
  0x30   : > { %p1862_p2 = pnand %p1860_p1, %p2133_p13 }
  0x32   : > { %p1863_p6 = pneg %p1862_p2 }
  0x34   : > { %p1868_p3 = pnand %p1866_p10, %p1863_p6 }
  0x36   : > { %1871 = shalt.err (!%p1868_p3)
}
  0x37   : > { %s1872_s7 = scalar_lea.vmem %s2123_s10, 2048  ;;  %p1880_p12 = scmp.lt.s32.totalorder %s2123_s10, %s2123_s10 }
  0x38   : > { %p1873_p5 = scmp.ne.s32.totalorder %s2123_s10, %s1872_s7  ;;  %p1881_p0 = scmp.lt.s32.totalorder %s1872_s7, %s1872_s7 }
  0x3a   : > { %p1875_p7 = pnand %p1873_p5, %p2133_p13  ;;  %p1882_p1 = por %p1881_p0, %p1880_p12 }
  0x3c   : > { %p1876_p9 = pneg %p1875_p7 }
  0x3e   : > { %p1883_p2 = pnand %p1882_p1, %p1876_p9 }
  0x40   : > { %1886 = shalt.err (!%p1883_p2)
}
  0x41   : > { %s2025_s19 = smov 128   ;;  %s2026_s30 = smov 8  }
  0x42   : > { %1701 = dma.hbm_to_vmem [thread:$0]  (!%p2119_p11), %s2805_s3, 2048, %s2123_s10, [#allocation6], %s2025_s19, %s2025_s19, %s2026_s30  }
  0x43   : > { %s2027_s12 = smov [#allocation8]   ;;  %s2181_s14 = sadd.s32 1, %s2019_s24  }
  0x44   : > { %s227_s13 = sshll.u32 %s2027_s12, 4  ;;  %s1887_s18 = scalar_lea.hbm %s2806_s4, 2048  ;;  %s228_s13 = int_to_ptr.vmem [resolvable:$true] %s227_s13 }
  0x45   : > { %p1888_p6 = scmp.ne.s32.totalorder %s2806_s4, %s1887_s18  ;;  %p1894_p5 = scmp.lt.u32.totalorder %s1887_s18, %s2806_s4 }
  0x47   : > { %p1890_p10 = pnand %p1888_p6, %p2133_p13 }
  0x49   : > { %p1891_p3 = pneg %p1890_p10 }
  0x4b   : > { %p1896_p7 = pnand %p1894_p5, %p1891_p3 }
  0x4d   : > { %1899 = shalt.err (!%p1896_p7)
}
  0x4e   : > { %s1900_s10 = scalar_lea.vmem %s228_s13, 2048  ;;  %p1908_p1 = scmp.lt.s32.totalorder %s228_s13, %s228_s13 }
  0x4f   : > { %p1901_p9 = scmp.ne.s32.totalorder %s228_s13, %s1900_s10  ;;  %p1909_p2 = scmp.lt.s32.totalorder %s1900_s10, %s1900_s10 }
  0x51   : > { %p1903_p12 = pnand %p1901_p9, %p2133_p13  ;;  %p1910_p4 = por %p1909_p2, %p1908_p1 }
  0x53   : > { %p1904_p0 = pneg %p1903_p12 }
  0x55   : > { %p1911_p8 = pnand %p1910_p4, %p1904_p0 }
  0x57   : > { %1914 = shalt.err (!%p1911_p8)
}
  0x58   : > { %1704 = dma.hbm_to_vmem [thread:$0]  (!%p2119_p11), %s2806_s4, 2048, %s228_s13, [#allocation9], %s2025_s19, %s2025_s19, %s2026_s30  }
  0x59   : > { %s28_s1 = ssub.s32 %s2019_s24, %s2181_s14  ;;  %s31_s16 = sadd.s32 1, %s2015_s23 }
  0x5a   : > { %p29_p4 = scmp.eq.s32.totalorder %s28_s1, 0  ;;  %p38_p8 = scmp.ne.s32.totalorder %s2015_s23, %s2011_s22 }
  0x5b   : > { %p39_p13 = scmp.eq.s32.totalorder %s2019_s24, 0  ;;  %p1716_p6 = scmp.lt.s32.totalorder %s2019_s24, 2 }
  0x5c   : > { %s2209_s8 = scalar_select %p29_p4, %s2015_s23, %s31_s16  }
  0x5d   : > { %p40_p10 = por %p39_p13, %p38_p8  ;;  %p2821_p3 = scmp.eq.s32.totalorder %s2089_s25, 1 }
  0x5e   : > { %s244_s11 = sand.u32 1, %s2015_s23   ;;  %s1548_s12 = smul.u32 1536, %s2019_s24 }
  0x5f   : > { %p2213_p5 = por %p2821_p3, %p38_p8  ;;  %s1676_s15 = smul.u32 96, %s244_s11 }
  0x60   : > { %p2219_p7 = pnand %p1716_p6, %p40_p10  ;;  %s2226_s13 = scalar_lea.hbm %s2802_s0, %s1548_s12 }
  0x61   : > { %s248_s18 = scalar_lea.vmem [#allocation2], %s1676_s15  ;;  %s2230_s10 = scalar_lea.sflag [#allocation3], %s244_s11 }
  0x62   : > { %s255_s7 = sshll.u32 %s248_s18, 4  ;;  %s1915_s20 = scalar_lea.hbm %s2226_s13, 1536  ;;  %s2228_s7 = int_to_ptr.vmem [resolvable:$true] %s255_s7 }
  0x63   : > { %p1916_p11 = scmp.ne.s32.totalorder %s2226_s13, %s1915_s20  ;;  %p1917_p9 = pneg %p2219_p7 }
  0x64   : > { %s1920_s16 = scalar_lea.hbm %s2802_s0, 3072  ;;  %p1921_p1 = scmp.lt.u32.totalorder %s2226_s13, %s2802_s0 }
  0x65   : > { %p1918_p12 = pnand %p1917_p9, %p1916_p11  ;;  %p1922_p2 = scmp.lt.u32.totalorder %s1920_s16, %s1915_s20 }
  0x66   : > { %p1924_p8 = scmp.lt.u32.totalorder %s1915_s20, %s2226_s13 }
  0x67   : > { %p1919_p0 = pneg %p1918_p12  ;;  %p1923_p4 = por %p1922_p2, %p1921_p1 }
  0x69   : > { %p1925_p13 = por %p1924_p8, %p1923_p4 }
  0x6b   : > { %p1926_p6 = pnand %p1925_p13, %p1919_p0 }
  0x6d   : > { %1929 = shalt.err (!%p1926_p6)
}
  0x6e   : > { %s1930_s11 = scalar_lea.vmem %s2228_s7, 1536  ;;  %s2028_s15 = smov [#allocation2]  }
  0x6f   : > { %p1931_p10 = scmp.ne.s32.totalorder %s2228_s7, %s1930_s11  ;;  %s1935_s30 = sshll.u32 %s2028_s15, 4  ;;  %s1936_s30 = int_to_ptr.vmem [resolvable:$false] %s1935_s30 }
  0x70   : > { %s1937_s18 = scalar_lea.vmem %s1936_s30, 3072  ;;  %p1938_p12 = scmp.lt.s32.totalorder %s2228_s7, %s1936_s30 }
  0x71   : > { %p1933_p3 = pnand %p1931_p10, %p1917_p9  ;;  %p1939_p1 = scmp.lt.s32.totalorder %s1937_s18, %s1930_s11 }
  0x73   : > { %p1934_p11 = pneg %p1933_p3  ;;  %p1940_p2 = por %p1939_p1, %p1938_p12 }
  0x75   : > { %p1941_p4 = pnand %p1940_p2, %p1934_p11 }
  0x77   : > { %1944 = shalt.err (!%p1941_p4)
}
  0x78   : > { %s2824_s20 = smov 4   ;;  %s2825_s9 = smov 64  }
  0x79   : > { %1708 = dma.hbm_to_vmem [thread:$0]  (!%p2219_p7), %s2226_s13, 1536, %s2228_s7, %s2230_s10, %s2825_s9, %s2825_s9, %s2824_s20  }
  0x7a   : > { %p2826_p9 = scmp.ne.s32.totalorder %s2817_s29, 0 }
  0x7b   : > { %s2264_s1 = sand.u32 (!%p2826_p9), 1, %s2011_s22   ;;  %p2827_p0 = scmp.ne.s32.totalorder (!%p2826_p9), %s2815_s27, 0 }
  0x7c   : > { %267 = sbr.rel (%p2826_p9) target bundleno = 736 (0x2e0), region = 44  ;;  %s270_s12 = scalar_lea.sflag (!%p2826_p9), [#allocation3], %s2264_s1 }
  0x7d   : > { %s1677_s16 = smul.u32 (!%p2826_p9), 96, %s2264_s1 }
  0x7f   : > { %s2268_s19 = scalar_lea.vmem (!%p2826_p9), [#allocation2], %s1677_s16 }
  0x83   : > { %1990 = dma.done.wait (%p2827_p0), %s270_s12, 1536  }
  0x84   : > { %1992 = vsyncadd (%p2827_p0), %s270_s12, 4294965760  ;;  %p2828_p7 = scmp.eq.s32.totalorder %s2089_s25, 0 }
  0x86   : > { %1994 = dma.done.wait (%p2828_p7), [#allocation6], 3072   ;;  %p2829_p8 = pmov %p2828_p7 }
  0x87   : > { %p2830_p13 = pmov %p2828_p7 }
  0x88   : > { %1996 = vsyncadd (%p2829_p8), [#allocation6], 4294964224 }
  0x89   : > { %1998 = dma.done.wait (%p2830_p13), [#allocation9], 2048   ;;  %p2831_p6 = pmov %p2828_p7 }
  0x8a   : > { %v2029_v0 = vmov 0   ;;  %v1763_v1 = vld [vmem:[#allocation5] sm:$0xff]   ;;  %v1764_v2 = vld [vmem:[#allocation5 + $0x8] sm:$0xff]   ;;  %v1765_v3 = vld [vmem:[#allocation5 + $0x10] sm:$0xff]   ;;  %s1678_s7 = smul.u32 384, %s2264_s1  ;;  %s2030_s16 = smov [#allocation10]  }
  0x8b   : > { %2000 = vsyncadd (%p2831_p6), [#allocation9], 4294965248  ;;  %817 = vmatprep.mubr.bf16.mxu1 %v2029_v0  ;;  %1572 = vmatprep.subr.bf16.mxu0 %v1763_v1  ;;  %v1766_v4 = vld [vmem:[#allocation5 + $0x18] sm:$0xff]   ;;  %v2284_v5 = vld [vmem:[%s2268_s19] sm:$0xf]  ;;  %s1551_s11 = smul.u32 6144, %s2089_s25 }
  0x8c   : > { %1573 = vmatpush3.bf16.msra.mxu0 %v1763_v1  ;;  %v2287_v6 = vld [vmem:[%s2268_s19 + $0x4] sm:$0xf]  ;;  %v357_v7 = vmax.bf16 %v2029_v0, %v2284_v5  ;;  %v1768_v12 = vld [vmem:[#allocation5 + $0x28] sm:$0xff]   ;;  %v1779_v18 = vld [vmem:[#allocation7 + $0x14] ss:$8 sps:$4 sm:$0xff]   ;;  %s2623_s10 = scalar_lea.vmem [#allocation10], %s1678_s7 }
  0x8d   : > { %1574 = vmatprep.subr.bf16.mxu0 %v1764_v2  ;;  %v358_v8 = vmax.bf16 %v2029_v0, %v2287_v6  ;;  %v1516_v9 = vcombine.low %v2284_v5, %v2287_v6  ;;  %v1767_v11 = vld [vmem:[#allocation5 + $0x20] sm:$0xff]   ;;  %v2296_v13 = vld [vmem:[%s2268_s19 + $0x48] sm:$0xf]  ;;  %v2299_v14 = vld [vmem:[%s2268_s19 + $0x4c] sm:$0xf]  ;;  %s1366_s15 = sshll.u32 %s2623_s10, 4  ;;  %s2752_s20 = scalar_lea.hbm %s2808_s6, %s1551_s11  ;;  %s2754_s15 = int_to_ptr.vmem [resolvable:$true] %s1366_s15 }
  0x8e   : > { %v1525_v15 = vcombine.low %v2296_v13, %v2299_v14  ;;  %v1773_v16 = vld [vmem:[#allocation7 + $0x4] ss:$8 sps:$4 sm:$0xff]   ;;  %v1775_v17 = vld [vmem:[#allocation7] ss:$8 sps:$4 sm:$0xff]   ;;  %v1781_v19 = vld [vmem:[#allocation7 + $0x10] ss:$8 sps:$4 sm:$0xff]  }
  0x8f   : > { %v1480_v10 = vcombine.low %v357_v7, %v358_v8  ;;  %785 = vmatprep.subr.bf16.mxu1 %v1773_v16  ;;  %v1769_v20 = vld [vmem:[#allocation5 + $0x30] sm:$0xff]   ;;  %v2304_v21 = vld [vmem:[%s2268_s19 + $0x8] sm:$0xf]  ;;  %v2307_v22 = vld [vmem:[%s2268_s19 + $0xc] sm:$0xf]  ;;  %s1352_s25 = scalar_lea.sflag [#allocation4], %s2264_s1 }
  0x90   : > { %1575 = vmatpush3.bf16.msra.mxu0 %v1764_v2  ;;  %786 = vmatpush1.bf16.msra.mxu1 %v1775_v17  ;;  %v1770_v23 = vld [vmem:[#allocation5 + $0x38] sm:$0xff]   ;;  %v2310_v24 = vld [vmem:[%s2268_s19 + $0x10] sm:$0xf]  ;;  %v1785_v25 = vld [vmem:[#allocation7 + $0x24] ss:$8 sps:$4 sm:$0xff]   ;;  %v359_v29 = vmax.bf16 %v2029_v0, %v2304_v21  ;;  %v360_v30 = vmax.bf16 %v2029_v0, %v2307_v22  ;;  %s1945_s9 = scalar_lea.vmem %s2754_s15, 6144 }
  0x91   : > { %1576 = vmatprep.subr.bf16.mxu0 %v1765_v3  ;;  %1588 = vmatprep.mubr.bf16.mxu0 %v1480_v10  ;;  %v2313_v26 = vld [vmem:[%s2268_s19 + $0x14] sm:$0xf]  ;;  %v1787_v27 = vld [vmem:[#allocation7 + $0x20] ss:$8 sps:$4 sm:$0xff]   ;;  %v361_v31 = vmax.bf16 %v2029_v0, %v2310_v24  ;;  %v2323_v33 = vld [vmem:[#allocation8 + $0x4] ss:$8 sps:$4 sm:$0xff]   ;;  %p1946_p10 = scmp.ne.s32.totalorder %s2754_s15, %s1945_s9 }
  0x92   : > { %787 = vmatprep.subr.bf16.mxu1 %v1779_v18  ;;  %v1791_v28 = vld [vmem:[#allocation7 + $0x34] ss:$8 sps:$4 sm:$0xff]   ;;  %v362_v32 = vmax.bf16 %v2029_v0, %v2313_v26  ;;  %v1793_v34 = vld [vmem:[#allocation7 + $0x30] ss:$8 sps:$4 sm:$0xff]   ;;  %v1797_v35 = vld [vmem:[#allocation7 + $0x44] ss:$8 sps:$4 sm:$0xff]   ;;  %v1481_v38 = vcombine.low %v359_v29, %v360_v30 }
  0x93   : > { %v2326_v36 = vld [vmem:[%s2268_s19 + $0x18] sm:$0xf]  ;;  %v2329_v37 = vld [vmem:[%s2268_s19 + $0x1c] sm:$0xf]  ;;  %v2332_v39 = vld [vmem:[%s2268_s19 + $0x20] sm:$0xf]  ;;  %p1947_p3 = pnand %p1946_p10, %p2213_p5 }
  0x94   : > { %1577 = vmatpush3.bf16.msra.mxu0 %v1765_v3  ;;  %788 = vmatpush1.bf16.msra.mxu1 %v1781_v19  ;;  %v2335_v40 = vld [vmem:[%s2268_s19 + $0x24] sm:$0xf]  ;;  %v2337_v41 = vld [vmem:[#allocation8] ss:$8 sps:$4 sm:$0xff]   ;;  %v2339_v42 = vld [vmem:[#allocation8 + $0x14] ss:$8 sps:$4 sm:$0xff]   ;;  %v1482_v43 = vcombine.low %v361_v31, %v362_v32  ;;  %v363_v46 = vmax.bf16 %v2029_v0, %v2326_v36  ;;  %v364_v47 = vmax.bf16 %v2029_v0, %v2329_v37 }
  0x95   : > { %1578 = vmatprep.subr.bf16.mxu0 %v1766_v4  ;;  %789 = vmatprep.subr.bf16.mxu1 %v1785_v25  ;;  %v1799_v44 = vld [vmem:[#allocation7 + $0x40] ss:$8 sps:$4 sm:$0xff]   ;;  %v1803_v45 = vld [vmem:[#allocation7 + $0x54] ss:$8 sps:$4 sm:$0xff]   ;;  %v365_v48 = vmax.bf16 %v2029_v0, %v2332_v39  ;;  %v366_v49 = vmax.bf16 %v2029_v0, %v2335_v40  ;;  %v2351_v50 = vld [vmem:[#allocation8 + $0x10] ss:$8 sps:$4 sm:$0xff]   ;;  %v375_v31 = vmax.bf16 %v2029_v0, %v2296_v13  ;;  %p1948_p11 = pneg %p1947_p3 }
  0x96   : > { %v2354_v51 = vld [vmem:[#allocation8 + $0x24] ss:$8 sps:$4 sm:$0xff]   ;;  %v1805_v52 = vld [vmem:[#allocation7 + $0x50] ss:$8 sps:$4 sm:$0xff]   ;;  %v1483_v53 = vcombine.low %v363_v46, %v364_v47  ;;  %v2357_v55 = vld [vmem:[%s2268_s19 + $0x28] sm:$0xf]  ;;  %v376_v32 = vmax.bf16 %v2029_v0, %v2299_v14  ;;  %v1520_v5 = vcombine.low %v2332_v39, %v2335_v40 }
  0x97   : > { %v1484_v54 = vcombine.low %v365_v48, %v366_v49  ;;  %v2360_v56 = vld [vmem:[%s2268_s19 + $0x2c] sm:$0xf]  ;;  %v2363_v57 = vld [vmem:[#allocation8 + $0x20] ss:$8 sps:$4 sm:$0xff]   ;;  %v2366_v58 = vld [vmem:[%s2268_s19 + $0x30] sm:$0xf]  ;;  %v367_v61 = vmax.bf16 %v2029_v0, %v2357_v55 }
  0x98   : > { %1579 = vmatpush3.bf16.msra.mxu0 %v1766_v4  ;;  %790 = vmatpush1.bf16.msra.mxu1 %v1787_v27  ;;  %v2369_v59 = vld [vmem:[%s2268_s19 + $0x34] sm:$0xf]  ;;  %v368_v62 = vmax.bf16 %v2029_v0, %v2360_v56  ;;  %v369_v63 = vmax.bf16 %v2029_v0, %v2366_v58  ;;  %v2383_v2 = vld [vmem:[#allocation8 + $0x30] ss:$8 sps:$4 sm:$0xff]   ;;  %v2386_v3 = vld [vmem:[#allocation8 + $0x44] ss:$8 sps:$4 sm:$0xff]   ;;  %v1521_v6 = vcombine.low %v2357_v55, %v2360_v56 }
  0x99   : > { %1580 = vmatprep.subr.bf16.mxu0 %v1767_v11  ;;  %791 = vmatprep.subr.bf16.mxu1 %v1791_v28  ;;  %v2372_v60 = vld [vmem:[#allocation8 + $0x34] ss:$8 sps:$4 sm:$0xff]   ;;  %v370_v1 = vmax.bf16 %v2029_v0, %v2369_v59  ;;  %v2389_v8 = vld [vmem:[%s2268_s19 + $0x38] sm:$0xf]  ;;  %v2401_v16 = vld [vmem:[%s2268_s19 + $0x44] sm:$0xf] }
  0x9a   : > { %v1485_v4 = vcombine.low %v367_v61, %v368_v62  ;;  %v2392_v10 = vld [vmem:[%s2268_s19 + $0x3c] sm:$0xf]  ;;  %v371_v18 = vmax.bf16 %v2029_v0, %v2389_v8  ;;  %v2415_v25 = vld [vmem:[#allocation8 + $0x50] ss:$8 sps:$4 sm:$0xff]   ;;  %v2423_v30 = vld [vmem:[%s2268_s19 + $0x54] sm:$0xf] }
  0x9b   : > { %v1486_v7 = vcombine.low %v369_v63, %v370_v1  ;;  %v2404_v17 = vld [vmem:[#allocation8 + $0x54] ss:$8 sps:$4 sm:$0xff]   ;;  %v372_v19 = vmax.bf16 %v2029_v0, %v2392_v10  ;;  %v2420_v29 = vld [vmem:[%s2268_s19 + $0x50] sm:$0xf]  ;;  %v1809_v49 = vld [vmem:[#allocation7 + $0x64] ss:$8 sps:$4 sm:$0xff]  }
  0x9c   : > { %1581 = vmatpush3.bf16.msra.mxu0 %v1767_v11  ;;  %792 = vmatpush1.bf16.msra.mxu1 %v1793_v34  ;;  %v2395_v11 = vld [vmem:[#allocation8 + $0x40] ss:$8 sps:$4 sm:$0xff]   ;;  %v377_v34 = vmax.bf16 %v2029_v0, %v2420_v29  ;;  %v1815_v61 = vld [vmem:[#allocation7 + $0x74] ss:$8 sps:$4 sm:$0xff]   ;;  %v1817_v63 = vld [vmem:[#allocation7 + $0x70] ss:$8 sps:$4 sm:$0xff]  }
  0x9d   : > { %1582 = vmatprep.subr.bf16.mxu0 %v1768_v12  ;;  %793 = vmatprep.subr.bf16.mxu1 %v1797_v35  ;;  %v1487_v27 = vcombine.low %v371_v18, %v372_v19  ;;  %v378_v35 = vmax.bf16 %v2029_v0, %v2423_v30  ;;  %v2450_v62 = vld [vmem:[#allocation8 + $0x74] ss:$8 sps:$4 sm:$0xff]   ;;  %v2452_v1 = vld [vmem:[#allocation8 + $0x70] ss:$8 sps:$4 sm:$0xff]   ;;  %s1949_s12 = sshll.u32 %s2030_s16, 4  ;;  %s1950_s12 = int_to_ptr.vmem [resolvable:$false] %s1949_s12 }
  0x9e   : > { %p1952_p12 = scmp.lt.s32.totalorder %s2754_s15, %s1950_s12 }
  0xa0   : > { %1583 = vmatpush3.bf16.msra.mxu0 %v1768_v12  ;;  %794 = vmatpush1.bf16.msra.mxu1 %v1799_v44  ;;  %v2398_v12 = vld [vmem:[%s2268_s19 + $0x40] sm:$0xf]  ;;  %v2434_v44 = vld [vmem:[%s2268_s19 + $0x58] sm:$0xf] }
  0xa1   : > { %1584 = vmatprep.subr.bf16.mxu0 %v1769_v20  ;;  %795 = vmatprep.subr.bf16.mxu1 %v1803_v45  ;;  %v2437_v45 = vld [vmem:[%s2268_s19 + $0x5c] sm:$0xf]  ;;  %v379_v46 = vmax.bf16 %v2029_v0, %v2434_v44  ;;  %s1951_s19 = scalar_lea.vmem %s1950_s12, 12288 }
  0xa2   : > { %v380_v47 = vmax.bf16 %v2029_v0, %v2437_v45  ;;  %v1527_v13 = vcombine.low %v2434_v44, %v2437_v45  ;;  %p1953_p1 = scmp.lt.s32.totalorder %s1951_s19, %s1945_s9 }
  0xa4   : > { %1585 = vmatpush3.bf16.msra.mxu0 %v1769_v20  ;;  %796 = vmatpush1.bf16.msra.mxu1 %v1805_v52  ;;  %v373_v20 = vmax.bf16 %v2029_v0, %v2398_v12  ;;  %v1491_v48 = vcombine.low %v379_v46, %v380_v47  ;;  %v2444_v52 = vld [vmem:[#allocation8 + $0x64] ss:$8 sps:$4 sm:$0xff]   ;;  %p1954_p2 = por %p1953_p1, %p1952_p12 }
  0xa5   : > { %1586 = vmatprep.subr.bf16.mxu0 %v1770_v23  ;;  %797 = vmatprep.subr.bf16.mxu1 %v1809_v49 }
  0xa6   : > { %p1955_p4 = pnand %p1954_p2, %p1948_p11 }
  0xa8   : > { %1587 = vmatpush3.bf16.msra.mxu0 %v1770_v23  ;;  %v374_v23 = vmax.bf16 %v2029_v0, %v2401_v16 }
  0xa9   : > { %1090 = vmatprep.subr.bf16.mxu0 %v2323_v33 }
  0xaa   : > { %v1488_v28 = vcombine.low %v373_v20, %v374_v23 }
  0xab   : > { %1589 = vmatmul.mubr.bf16.vlgmr.msra.gmra.mrb[0].mxu0 %v1481_v38  ;;  %v1489_v38 = vcombine.low %v375_v31, %v376_v32 }
  0xac   : > { %1592 = vmatprep.mubr.bf16.mxu0 %v1482_v43  ;;  %1091 = vmatpush1.bf16.msra.mxu0 %v2337_v41  ;;  %v1490_v43 = vcombine.low %v377_v34, %v378_v35 }
  0xad   : > { %1092 = vmatprep.subr.bf16.mxu0 %v2339_v42 }
  0xb0   : > { %1093 = vmatpush1.bf16.msra.mxu0 %v2351_v50 }
  0xb1   : > { %1094 = vmatprep.subr.bf16.mxu0 %v2354_v51 }
  0xb3   : > { %1593 = vmatmul.mubr.bf16.gmra.mrb[4].mxu0 %v1483_v53  ;;  %v1811_v53 = vld [vmem:[#allocation7 + $0x60] ss:$8 sps:$4 sm:$0xff]  }
  0xb4   : > { %1596 = vmatprep.mubr.bf16.mxu0 %v1484_v54  ;;  %1095 = vmatpush1.bf16.msra.mxu0 %v2363_v57  ;;  %v2446_v54 = vld [vmem:[#allocation8 + $0x60] ss:$8 sps:$4 sm:$0xff]  }
  0xb5   : > { %1096 = vmatprep.subr.bf16.mxu0 %v2372_v60  ;;  %798 = vmatpush1.bf16.msra.mxu1 %v1811_v53 }
  0xb6   : > { %799 = vmatprep.subr.bf16.mxu1 %v1815_v61 }
  0xb8   : > { %1097 = vmatpush1.bf16.msra.mxu0 %v2383_v2 }
  0xb9   : > { %1098 = vmatprep.subr.bf16.mxu0 %v2386_v3  ;;  %800 = vmatpush1.bf16.msra.mxu1 %v1817_v63 }
  0xba   : > { %1612 = vmatprep.subr.bf16.mxu1 %v2323_v33  ;;  %v1519_v33 = vcombine.low %v2326_v36, %v2329_v37 }
  0xbb   : > { %1597 = vmatmul.mubr.bf16.gmra.mrb[8].mxu0 %v1485_v4  ;;  %v1517_v4 = vcombine.low %v2304_v21, %v2307_v22  ;;  %v1523_v21 = vcombine.low %v2389_v8, %v2392_v10  ;;  %v1524_v22 = vcombine.low %v2398_v12, %v2401_v16 }
  0xbc   : > { %1600 = vmatprep.mubr.bf16.mxu0 %v1486_v7  ;;  %1099 = vmatpush1.bf16.msra.mxu0 %v2395_v11  ;;  %v1518_v7 = vcombine.low %v2310_v24, %v2313_v26  ;;  %v2487_v24 = vld [vmem:[%s2804_s2] ss:$0 sm:$0xff] }
  0xbd   : > { %1100 = vmatprep.subr.bf16.mxu0 %v2404_v17 }
  0xc0   : > { %1101 = vmatpush1.bf16.msra.mxu0 %v2415_v25 }
  0xc1   : > { %1102 = vmatprep.subr.bf16.mxu0 %v2444_v52 }
  0xc3   : > { %1601 = vmatmul.mubr.bf16.gmra.mrb[12].mxu0 %v1487_v27 }
  0xc4   : > { %1604 = vmatprep.mubr.bf16.mxu0 %v1488_v28  ;;  %1103 = vmatpush1.bf16.msra.mxu0 %v2446_v54 }
  0xc5   : > { %1104 = vmatprep.subr.bf16.mxu0 %v2450_v62 }
  0xc8   : > { %1105 = vmatpush1.bf16.msra.mxu0 %v2452_v1 }
  0xcb   : > { %1605 = vmatmul.mubr.bf16.gmra.mrb[16].mxu0 %v1489_v38 }
  0xcc   : > { %1608 = vmatprep.mubr.bf16.mxu0 %v1490_v43 }
  0xd3   : > { %1609 = vmatmul.mubr.bf16.gmra.mrb[20].mxu0 %v1491_v48 }
  0xd4   : > { %1122 = vmatprep.mubr.bf16.mxu0 %v2029_v0 }
  0xdb   : > { %1123 = vmatmul.mubr.bf16.vlgmr.msra.gmra.mrb[24].mxu0 %v1516_v9  ;;  %v1522_v9 = vcombine.low %v2366_v58, %v2369_v59 }
  0xdc   : > { %1132 = vmatprep.mubr.bf16.mxu0 %v2029_v0 }
  0xe3   : > { %1133 = vmatmul.mubr.bf16.gmra.mrb[28].mxu0 %v1517_v4 }
  0xe4   : > { %1142 = vmatprep.mubr.bf16.mxu0 %v2029_v0 }
  0xeb   : > { %1143 = vmatmul.mubr.bf16.gmra.mrb[32].mxu0 %v1518_v7 }
  0xec   : > { %1152 = vmatprep.mubr.bf16.mxu0 %v2029_v0 }
  0xf3   : > { %1153 = vmatmul.mubr.bf16.gmra.mrb[36].mxu0 %v1519_v33 }
  0xf4   : > { %1162 = vmatprep.mubr.bf16.mxu0 %v2029_v0 }
  0xfb   : > { %1163 = vmatmul.mubr.bf16.gmra.mrb[40].mxu0 %v1520_v5 }
  0xfc   : > { %1172 = vmatprep.mubr.bf16.mxu0 %v2029_v0 }
 0x103   : > { %1173 = vmatmul.mubr.bf16.gmra.mrb[44].mxu0 %v1521_v6 }
 0x104   : > { %1182 = vmatprep.mubr.bf16.mxu0 %v2029_v0 }
 0x10b   : > { %1183 = vmatmul.mubr.bf16.gmra.mrb[48].mxu0 %v1522_v9 }
 0x10c   : > { %1192 = vmatprep.mubr.bf16.mxu0 %v2029_v0 }
 0x113   : > { %1193 = vmatmul.mubr.bf16.gmra.mrb[52].mxu0 %v1523_v21 }
 0x114   : > { %1202 = vmatprep.mubr.bf16.mxu0 %v2029_v0 }
 0x11b   : > { %1203 = vmatmul.mubr.bf16.gmra.mrb[56].mxu0 %v1524_v22 }
 0x17e   : > { %v1590_v26 = vpop.f32.mrb[0].mxu0 }
 0x17f   : > { %v567_v36 = vadd.f32 %v1590_v26, %v2487_v24  ;;  %v558_v37 = vpop.f32.mrb[1].mxu0 }
 0x180   : > { %v559_v39 = vadd.f32 %v2487_v24, %v558_v37  ;;  %v1591_v40 = vpop.f32.mrb[2].mxu0 }
 0x181   : > { %v570_v55 = vadd.f32 %v1591_v40, %v2487_v24  ;;  %v561_v56 = vpop.f32.mrb[3].mxu0  ;;  %v655_v59 = vmax.f32 %v567_v36, 0.0 }
 0x182   : > { %v562_v58 = vadd.f32 %v2487_v24, %v561_v56  ;;  %v653_v10 = vmax.f32 %v559_v39, 0.0 }
 0x183   : > { %v656_v8 = vmax.f32 %v570_v55, 0.0 }
 0x184   : > { %v654_v12 = vmax.f32 %v562_v58, 0.0 }
 0x185   : > { %v678_v16 = vpack.c.bf16 %v656_v8, %v655_v59 }
 0x186   : > { %v677_v18 = vpack.c.bf16 %v654_v12, %v653_v10  ;;  %v1594_v19 = vpop.f32.mrb[4].mxu0 }
 0x187   : > { %v583_v20 = vadd.f32 %v1594_v19, %v2487_v24  ;;  %v574_v23 = vpop.f32.mrb[5].mxu0 }
 0x188   : > { %818 = vmatmul.mubr.bf16.vlgmr.msra.gmra.mrb[0].mxu1 %v677_v18  ;;  %v575_v27 = vadd.f32 %v2487_v24, %v574_v23  ;;  %v1595_v28 = vpop.f32.mrb[6].mxu0 }
 0x189   : > { %1620 = vmatpush1.bf16.msra.mxu1 %v2337_v41  ;;  %v659_v31 = vmax.f32 %v583_v20, 0.0  ;;  %v586_v32 = vadd.f32 %v1595_v28, %v2487_v24  ;;  %v577_v34 = vpop.f32.mrb[7].mxu0  ;;  %827 = vmatprep.mubr.bf16.mxu1 %v2029_v0 }
 0x18a   : > { %v657_v35 = vmax.f32 %v575_v27, 0.0  ;;  %v578_v38 = vadd.f32 %v2487_v24, %v577_v34  ;;  %1613 = vmatprep.subr.bf16.mxu1 %v2339_v42 }
 0x18b   : > { %v660_v43 = vmax.f32 %v586_v32, 0.0 }
 0x18c   : > { %v658_v46 = vmax.f32 %v578_v38, 0.0 }
 0x18d   : > { %v680_v47 = vpack.c.bf16 %v660_v43, %v659_v31  ;;  %1621 = vmatpush1.bf16.msra.mxu1 %v2351_v50 }
 0x18e   : > { %v679_v48 = vpack.c.bf16 %v658_v46, %v657_v35  ;;  %v1598_v49 = vpop.f32.mrb[8].mxu0  ;;  %1614 = vmatprep.subr.bf16.mxu1 %v2354_v51 }
 0x18f   : > { %v599_v41 = vadd.f32 %v1598_v49, %v2487_v24  ;;  %v590_v53 = vpop.f32.mrb[9].mxu0 }
 0x190   : > { %828 = vmatmul.mubr.bf16.gmra.mrb[4].mxu1 %v678_v16  ;;  %v591_v61 = vadd.f32 %v2487_v24, %v590_v53  ;;  %v1599_v63 = vpop.f32.mrb[10].mxu0 }
 0x191   : > { %837 = vmatprep.mubr.bf16.mxu1 %v2029_v0  ;;  %v663_v4 = vmax.f32 %v599_v41, 0.0  ;;  %v602_v42 = vadd.f32 %v1599_v63, %v2487_v24  ;;  %v593_v7 = vpop.f32.mrb[11].mxu0  ;;  %1622 = vmatpush1.bf16.msra.mxu1 %v2363_v57 }
 0x192   : > { %v661_v50 = vmax.f32 %v591_v61, 0.0  ;;  %v594_v33 = vadd.f32 %v2487_v24, %v593_v7  ;;  %1615 = vmatprep.subr.bf16.mxu1 %v2372_v60 }
 0x193   : > { %v664_v51 = vmax.f32 %v602_v42, 0.0 }
 0x194   : > { %v662_v5 = vmax.f32 %v594_v33, 0.0  ;;  %v1526_v33 = vcombine.low %v2420_v29, %v2423_v30 }
 0x195   : > { %v682_v6 = vpack.c.bf16 %v664_v51, %v663_v4  ;;  %1623 = vmatpush1.bf16.msra.mxu1 %v2383_v2 }
 0x196   : > { %v681_v9 = vpack.c.bf16 %v662_v5, %v661_v50  ;;  %v1602_v21 = vpop.f32.mrb[12].mxu0  ;;  %1616 = vmatprep.subr.bf16.mxu1 %v2386_v3 }
 0x197   : > { %v615_v22 = vadd.f32 %v1602_v21, %v2487_v24  ;;  %v606_v26 = vpop.f32.mrb[13].mxu0 }
 0x198   : > { %838 = vmatmul.mubr.bf16.gmra.mrb[8].mxu1 %v679_v48  ;;  %v607_v57 = vadd.f32 %v2487_v24, %v606_v26  ;;  %v1603_v36 = vpop.f32.mrb[14].mxu0 }
 0x199   : > { %847 = vmatprep.mubr.bf16.mxu1 %v2029_v0  ;;  %v667_v37 = vmax.f32 %v615_v22, 0.0  ;;  %v618_v60 = vadd.f32 %v1603_v36, %v2487_v24  ;;  %v609_v39 = vpop.f32.mrb[15].mxu0  ;;  %1624 = vmatpush1.bf16.msra.mxu1 %v2395_v11 }
 0x19a   : > { %v665_v2 = vmax.f32 %v607_v57, 0.0  ;;  %v610_v40 = vadd.f32 %v2487_v24, %v609_v39  ;;  %1617 = vmatprep.subr.bf16.mxu1 %v2404_v17 }
 0x19b   : > { %v668_v3 = vmax.f32 %v618_v60, 0.0 }
 0x19c   : > { %v666_v55 = vmax.f32 %v610_v40, 0.0 }
 0x19d   : > { %v684_v56 = vpack.c.bf16 %v668_v3, %v667_v37  ;;  %1625 = vmatpush1.bf16.msra.mxu1 %v2415_v25 }
 0x19e   : > { %v683_v58 = vpack.c.bf16 %v666_v55, %v665_v2  ;;  %v1606_v59 = vpop.f32.mrb[16].mxu0  ;;  %1618 = vmatprep.subr.bf16.mxu1 %v2444_v52 }
 0x19f   : > { %v631_v8 = vadd.f32 %v1606_v59, %v2487_v24  ;;  %v622_v10 = vpop.f32.mrb[17].mxu0 }
 0x1a0   : > { %848 = vmatmul.mubr.bf16.gmra.mrb[12].mxu1 %v680_v47  ;;  %v623_v11 = vadd.f32 %v2487_v24, %v622_v10  ;;  %v1607_v12 = vpop.f32.mrb[18].mxu0  ;;  %v1245_v10 = vlaneseq }
 0x1a1   : > { %857 = vmatprep.mubr.bf16.mxu1 %v2029_v0  ;;  %v671_v16 = vmax.f32 %v631_v8, 0.0  ;;  %v634_v17 = vadd.f32 %v1607_v12, %v2487_v24  ;;  %v625_v18 = vpop.f32.mrb[19].mxu0  ;;  %1626 = vmatpush1.bf16.msra.mxu1 %v2446_v54 }
 0x1a2   : > { %v669_v25 = vmax.f32 %v623_v11, 0.0  ;;  %v626_v19 = vadd.f32 %v2487_v24, %v625_v18  ;;  %1619 = vmatprep.subr.bf16.mxu1 %v2450_v62  ;;  %v1246_v11 = vshrl.u32 %v1245_v10, 7 }
 0x1a3   : > { %v672_v52 = vmax.f32 %v634_v17, 0.0 }
 0x1a4   : > { %v670_v20 = vmax.f32 %v626_v19, 0.0  ;;  %v1247_v12 = vsub.s32 0, %v1246_v11  ;;  %v1251_v17 = vsub.s32 1, %v1246_v11 }
 0x1a5   : > { %v686_v23 = vpack.c.bf16 %v672_v52, %v671_v16  ;;  %1627 = vmatpush1.bf16.msra.mxu1 %v2452_v1  ;;  %v1243_v16 = vld [vmem:[%s2807_s5] sm:$0x3] }
 0x1a6   : > { %v685_v27 = vpack.c.bf16 %v670_v20, %v669_v25  ;;  %v1610_v28 = vpop.f32.mrb[20].mxu0  ;;  %v2617_v18 = vrot.slane %v1243_v16, %v1247_v12  ;;  %v2619_v19 = vrot.slane %v1243_v16, %v1251_v17 }
 0x1a7   : > { %v647_v31 = vadd.f32 %v1610_v28, %v2487_v24  ;;  %v638_v32 = vpop.f32.mrb[21].mxu0 }
 0x1a8   : > { %858 = vmatmul.mubr.bf16.gmra.mrb[16].mxu1 %v681_v9  ;;  %v639_v34 = vadd.f32 %v2487_v24, %v638_v32  ;;  %v1611_v35 = vpop.f32.mrb[22].mxu0 }
 0x1a9   : > { %867 = vmatprep.mubr.bf16.mxu1 %v2029_v0  ;;  %v675_v54 = vmax.f32 %v647_v31, 0.0  ;;  %v650_v38 = vadd.f32 %v1611_v35, %v2487_v24  ;;  %v641_v62 = vpop.f32.mrb[23].mxu0 }
 0x1aa   : > { %v673_v43 = vmax.f32 %v639_v34, 0.0  ;;  %v642_v46 = vadd.f32 %v2487_v24, %v641_v62 }
 0x1ab   : > { %v676_v47 = vmax.f32 %v650_v38, 0.0 }
 0x1ac   : > { %v674_v1 = vmax.f32 %v642_v46, 0.0 }
 0x1ad   : > { %v688_v48 = vpack.c.bf16 %v676_v47, %v675_v54 }
 0x1ae   : > { %v687_v49 = vpack.c.bf16 %v674_v1, %v673_v43  ;;  %v1124_v24 = vpop.f32.mrb[24].mxu0 }
 0x1af   : > { %v1126_v41 = vpop.f32.mrb[25].mxu0 }
 0x1b0   : > { %868 = vmatmul.mubr.bf16.gmra.mrb[20].mxu1 %v682_v6  ;;  %v1128_v53 = vpop.f32.mrb[26].mxu0 }
 0x1b1   : > { %877 = vmatprep.mubr.bf16.mxu1 %v2029_v0  ;;  %v1130_v61 = vpop.f32.mrb[27].mxu0 }
 0x1b6   : > { %v2540_v63 = vpop.f32.mrb[28].mxu0 }
 0x1b7   : > { %v2542_v4 = vpop.f32.mrb[29].mxu0 }
 0x1b8   : > { %878 = vmatmul.mubr.bf16.gmra.mrb[24].mxu1 %v683_v58  ;;  %v2544_v42 = vpop.f32.mrb[30].mxu0 }
 0x1b9   : > { %887 = vmatprep.mubr.bf16.mxu1 %v2029_v0  ;;  %v2546_v7 = vpop.f32.mrb[31].mxu0 }
 0x1be   : > { %v2552_v50 = vpop.f32.mrb[32].mxu0 }
 0x1bf   : > { %v2556_v51 = vpop.f32.mrb[33].mxu0 }
 0x1c0   : > { %888 = vmatmul.mubr.bf16.gmra.mrb[28].mxu1 %v684_v56  ;;  %v2558_v5 = vpop.f32.mrb[34].mxu0 }
 0x1c1   : > { %897 = vmatprep.mubr.bf16.mxu1 %v2029_v0  ;;  %v2560_v6 = vpop.f32.mrb[35].mxu0 }
 0x1c6   : > { %v2563_v9 = vpop.f32.mrb[36].mxu0 }
 0x1c7   : > { %v2567_v14 = vpop.f32.mrb[37].mxu0 }
 0x1c8   : > { %898 = vmatmul.mubr.bf16.gmra.mrb[32].mxu1 %v685_v27 }
 0x1c9   : > { %907 = vmatprep.mubr.bf16.mxu1 %v2029_v0 }
 0x1d0   : > { %908 = vmatmul.mubr.bf16.gmra.mrb[36].mxu1 %v686_v23 }
 0x1d1   : > { %917 = vmatprep.mubr.bf16.mxu1 %v2029_v0 }
 0x1d8   : > { %918 = vmatmul.mubr.bf16.gmra.mrb[40].mxu1 %v687_v49 }
 0x1d9   : > { %927 = vmatprep.mubr.bf16.mxu1 %v2029_v0 }
 0x1e0   : > { %928 = vmatmul.mubr.bf16.gmra.mrb[44].mxu1 %v688_v48 }
 0x1e1   : > { %1212 = vmatprep.mubr.bf16.mxu1 %v2029_v0 }
 0x1e8   : > { %1213 = vmatmul.mubr.bf16.vlgmr.msra.gmra.mrb[36].mxu1 %v1525_v15  ;;  %v2569_v15 = vpop.f32.mrb[38].mxu0 }
 0x1e9   : > { %1222 = vmatprep.mubr.bf16.mxu1 %v2029_v0  ;;  %v2571_v21 = vpop.f32.mrb[39].mxu0 }
 0x1ea   : > { %v2573_v29 = vpop.f32.mrb[40].mxu0 }
 0x1eb   : > { %v2575_v30 = vpop.f32.mrb[41].mxu0 }
 0x1ec   : > { %v2577_v22 = vpop.f32.mrb[42].mxu0 }
 0x1ed   : > { %v2579_v26 = vpop.f32.mrb[43].mxu0 }
 0x1f0   : > { %1223 = vmatmul.mubr.bf16.gmra.mrb[40].mxu1 %v1526_v33 }
 0x1f1   : > { %1232 = vmatprep.mubr.bf16.mxu1 %v2029_v0  ;;  %v2581_v0 = vpop.f32.mrb[44].mxu0 }
 0x1f2   : > { %v2583_v57 = vpop.f32.mrb[45].mxu0 }
 0x1f3   : > { %v2585_v44 = vpop.f32.mrb[46].mxu0 }
 0x1f4   : > { %v2587_v45 = vpop.f32.mrb[47].mxu0 }
 0x1f5   : > { %v2589_v36 = vpop.f32.mrb[48].mxu0 }
 0x1f6   : > { %v2591_v37 = vpop.f32.mrb[49].mxu0 }
 0x1f7   : > { %v2593_v60 = vpop.f32.mrb[50].mxu0 }
 0x1f8   : > { %1233 = vmatmul.mubr.bf16.gmra.mrb[44].mxu1 %v1527_v13  ;;  %v2595_v39 = vpop.f32.mrb[51].mxu0 }
 0x1f9   : > { %v2597_v2 = vpop.f32.mrb[52].mxu0 }
 0x1fa   : > { %v2599_v40 = vpop.f32.mrb[53].mxu0 }
 0x1fb   : > { %v2601_v3 = vpop.f32.mrb[54].mxu0 }
 0x1fc   : > { %v2603_v55 = vpop.f32.mrb[55].mxu0 }
 0x1fd   : > { %v2605_v56 = vpop.f32.mrb[56].mxu0 }
 0x1fe   : > { %v2607_v58 = vpop.f32.mrb[57].mxu0 }
 0x1ff   : > { %v2609_v59 = vpop.f32.mrb[58].mxu0 }
 0x200   : > { %v2611_v8 = vpop.f32.mrb[59].mxu0 }
 0x25b   : > { %v819_v25 = vpop.f32.mrb[0].mxu1 }
 0x25c   : > { %v1125_v52 = vadd.f32 %v1124_v24, %v819_v25  ;;  %v821_v20 = vpop.f32.mrb[1].mxu1 }
 0x25d   : > { %v1127_v23 = vadd.f32 %v1126_v41, %v821_v20  ;;  %v823_v27 = vpop.f32.mrb[2].mxu1 }
 0x25e   : > { %v1255_v28 = vadd.f32 %v2617_v18, %v1125_v52  ;;  %v1129_v31 = vadd.f32 %v1128_v53, %v823_v27  ;;  %v825_v32 = vpop.f32.mrb[3].mxu1 }
 0x25f   : > { %v1256_v34 = vadd.f32 %v2619_v19, %v1127_v23  ;;  %v1131_v35 = vadd.f32 %v1130_v61, %v825_v32 }
 0x260   : > { %1303 = vst [vmem:[%s2623_s10] sm:$0xff] %v1255_v28  ;;  %v1257_v54 = vadd.f32 %v2617_v18, %v1129_v31 }
 0x261   : > { %1304 = vst [vmem:[%s2623_s10 + $0x8] sm:$0xff] %v1256_v34  ;;  %v1258_v38 = vadd.f32 %v2619_v19, %v1131_v35 }
 0x262   : > { %1305 = vst [vmem:[%s2623_s10 + $0x10] sm:$0xff] %v1257_v54 }
 0x263   : > { %1306 = vst [vmem:[%s2623_s10 + $0x18] sm:$0xff] %v1258_v38  ;;  %v829_v62 = vpop.f32.mrb[4].mxu1 }
 0x264   : > { %v1135_v43 = vadd.f32 %v2540_v63, %v829_v62  ;;  %v831_v46 = vpop.f32.mrb[5].mxu1 }
 0x265   : > { %v1137_v47 = vadd.f32 %v2542_v4, %v831_v46  ;;  %v833_v1 = vpop.f32.mrb[6].mxu1 }
 0x266   : > { %v1259_v48 = vadd.f32 %v2617_v18, %v1135_v43  ;;  %v1139_v49 = vadd.f32 %v2544_v42, %v833_v1  ;;  %v835_v24 = vpop.f32.mrb[7].mxu1 }
 0x267   : > { %v1260_v41 = vadd.f32 %v2619_v19, %v1137_v47  ;;  %v1141_v53 = vadd.f32 %v2546_v7, %v835_v24 }
 0x268   : > { %1307 = vst [vmem:[%s2623_s10 + $0x20] sm:$0xff] %v1259_v48  ;;  %v1261_v61 = vadd.f32 %v2617_v18, %v1139_v49 }
 0x269   : > { %1308 = vst [vmem:[%s2623_s10 + $0x28] sm:$0xff] %v1260_v41  ;;  %v1262_v63 = vadd.f32 %v2619_v19, %v1141_v53 }
 0x26a   : > { %1309 = vst [vmem:[%s2623_s10 + $0x30] sm:$0xff] %v1261_v61 }
 0x26b   : > { %1310 = vst [vmem:[%s2623_s10 + $0x38] sm:$0xff] %v1262_v63  ;;  %v839_v4 = vpop.f32.mrb[8].mxu1 }
 0x26c   : > { %v1145_v42 = vadd.f32 %v2552_v50, %v839_v4  ;;  %v841_v33 = vpop.f32.mrb[9].mxu1 }
 0x26d   : > { %v1147_v13 = vadd.f32 %v2556_v51, %v841_v33  ;;  %v843_v10 = vpop.f32.mrb[10].mxu1 }
 0x26e   : > { %v1263_v7 = vadd.f32 %v2617_v18, %v1145_v42  ;;  %v1149_v11 = vadd.f32 %v2558_v5, %v843_v10  ;;  %v845_v12 = vpop.f32.mrb[11].mxu1 }
 0x26f   : > { %v1264_v16 = vadd.f32 %v2619_v19, %v1147_v13  ;;  %v1151_v17 = vadd.f32 %v2560_v6, %v845_v12 }
 0x270   : > { %1311 = vst [vmem:[%s2623_s10 + $0x40] sm:$0xff] %v1263_v7  ;;  %v1265_v25 = vadd.f32 %v2617_v18, %v1149_v11 }
 0x271   : > { %1312 = vst [vmem:[%s2623_s10 + $0x48] sm:$0xff] %v1264_v16  ;;  %v1266_v50 = vadd.f32 %v2619_v19, %v1151_v17 }
 0x272   : > { %1313 = vst [vmem:[%s2623_s10 + $0x50] sm:$0xff] %v1265_v25 }
 0x273   : > { %1314 = vst [vmem:[%s2623_s10 + $0x58] sm:$0xff] %v1266_v50  ;;  %v849_v51 = vpop.f32.mrb[12].mxu1 }
 0x274   : > { %v1155_v5 = vadd.f32 %v2563_v9, %v849_v51  ;;  %v851_v52 = vpop.f32.mrb[13].mxu1 }
 0x275   : > { %v1157_v20 = vadd.f32 %v2567_v14, %v851_v52  ;;  %v853_v23 = vpop.f32.mrb[14].mxu1 }
 0x276   : > { %v1267_v6 = vadd.f32 %v2617_v18, %v1155_v5  ;;  %v1159_v27 = vadd.f32 %v2569_v15, %v853_v23  ;;  %v855_v28 = vpop.f32.mrb[15].mxu1 }
 0x277   : > { %v1268_v31 = vadd.f32 %v2619_v19, %v1157_v20  ;;  %v1161_v32 = vadd.f32 %v2571_v21, %v855_v28 }
 0x278   : > { %1315 = vst [vmem:[%s2623_s10 + $0x60] sm:$0xff] %v1267_v6  ;;  %v1269_v34 = vadd.f32 %v2617_v18, %v1159_v27 }
 0x279   : > { %1316 = vst [vmem:[%s2623_s10 + $0x68] sm:$0xff] %v1268_v31  ;;  %v1270_v9 = vadd.f32 %v2619_v19, %v1161_v32 }
 0x27a   : > { %1317 = vst [vmem:[%s2623_s10 + $0x70] sm:$0xff] %v1269_v34 }
 0x27b   : > { %1318 = vst [vmem:[%s2623_s10 + $0x78] sm:$0xff] %v1270_v9  ;;  %v859_v14 = vpop.f32.mrb[16].mxu1 }
 0x27c   : > { %v1165_v15 = vadd.f32 %v2573_v29, %v859_v14  ;;  %v861_v35 = vpop.f32.mrb[17].mxu1 }
 0x27d   : > { %v1167_v54 = vadd.f32 %v2575_v30, %v861_v35  ;;  %v863_v38 = vpop.f32.mrb[18].mxu1 }
 0x27e   : > { %v1271_v21 = vadd.f32 %v2617_v18, %v1165_v15  ;;  %v1169_v62 = vadd.f32 %v2577_v22, %v863_v38  ;;  %v865_v43 = vpop.f32.mrb[19].mxu1 }
 0x27f   : > { %v1272_v46 = vadd.f32 %v2619_v19, %v1167_v54  ;;  %v1171_v47 = vadd.f32 %v2579_v26, %v865_v43 }
 0x280   : > { %1319 = vst [vmem:[%s2623_s10 + $0x80] sm:$0xff] %v1271_v21  ;;  %v1273_v1 = vadd.f32 %v2617_v18, %v1169_v62 }
 0x281   : > { %1320 = vst [vmem:[%s2623_s10 + $0x88] sm:$0xff] %v1272_v46  ;;  %v1274_v29 = vadd.f32 %v2619_v19, %v1171_v47 }
 0x282   : > { %1321 = vst [vmem:[%s2623_s10 + $0x90] sm:$0xff] %v1273_v1 }
 0x283   : > { %1322 = vst [vmem:[%s2623_s10 + $0x98] sm:$0xff] %v1274_v29  ;;  %v869_v30 = vpop.f32.mrb[20].mxu1 }
 0x284   : > { %v1175_v22 = vadd.f32 %v2581_v0, %v869_v30  ;;  %v871_v48 = vpop.f32.mrb[21].mxu1 }
 0x285   : > { %v1177_v49 = vadd.f32 %v2583_v57, %v871_v48  ;;  %v873_v24 = vpop.f32.mrb[22].mxu1 }
 0x286   : > { %v1275_v26 = vadd.f32 %v2617_v18, %v1175_v22  ;;  %v1179_v41 = vadd.f32 %v2585_v44, %v873_v24  ;;  %v875_v53 = vpop.f32.mrb[23].mxu1 }
 0x287   : > { %v1276_v61 = vadd.f32 %v2619_v19, %v1177_v49  ;;  %v1181_v63 = vadd.f32 %v2587_v45, %v875_v53 }
 0x288   : > { %1323 = vst [vmem:[%s2623_s10 + $0xa0] sm:$0xff] %v1275_v26  ;;  %v1277_v4 = vadd.f32 %v2617_v18, %v1179_v41 }
 0x289   : > { %1324 = vst [vmem:[%s2623_s10 + $0xa8] sm:$0xff] %v1276_v61  ;;  %v1278_v0 = vadd.f32 %v2619_v19, %v1181_v63 }
 0x28a   : > { %1325 = vst [vmem:[%s2623_s10 + $0xb0] sm:$0xff] %v1277_v4 }
 0x28b   : > { %1326 = vst [vmem:[%s2623_s10 + $0xb8] sm:$0xff] %v1278_v0  ;;  %v879_v57 = vpop.f32.mrb[24].mxu1 }
 0x28c   : > { %v1185_v44 = vadd.f32 %v2589_v36, %v879_v57  ;;  %v881_v42 = vpop.f32.mrb[25].mxu1 }
 0x28d   : > { %v1187_v33 = vadd.f32 %v2591_v37, %v881_v42  ;;  %v883_v13 = vpop.f32.mrb[26].mxu1 }
 0x28e   : > { %v1279_v45 = vadd.f32 %v2617_v18, %v1185_v44  ;;  %v1189_v10 = vadd.f32 %v2593_v60, %v883_v13  ;;  %v885_v7 = vpop.f32.mrb[27].mxu1 }
 0x28f   : > { %v1280_v11 = vadd.f32 %v2619_v19, %v1187_v33  ;;  %v1191_v12 = vadd.f32 %v2595_v39, %v885_v7 }
 0x290   : > { %1327 = vst [vmem:[%s2623_s10 + $0xc0] sm:$0xff] %v1279_v45  ;;  %v1281_v16 = vadd.f32 %v2617_v18, %v1189_v10 }
 0x291   : > { %1328 = vst [vmem:[%s2623_s10 + $0xc8] sm:$0xff] %v1280_v11  ;;  %v1282_v36 = vadd.f32 %v2619_v19, %v1191_v12 }
 0x292   : > { %1329 = vst [vmem:[%s2623_s10 + $0xd0] sm:$0xff] %v1281_v16 }
 0x293   : > { %1330 = vst [vmem:[%s2623_s10 + $0xd8] sm:$0xff] %v1282_v36  ;;  %v889_v37 = vpop.f32.mrb[28].mxu1 }
 0x294   : > { %v1195_v60 = vadd.f32 %v2597_v2, %v889_v37  ;;  %v891_v17 = vpop.f32.mrb[29].mxu1 }
 0x295   : > { %v1197_v25 = vadd.f32 %v2599_v40, %v891_v17  ;;  %v893_v50 = vpop.f32.mrb[30].mxu1 }
 0x296   : > { %v1283_v39 = vadd.f32 %v2617_v18, %v1195_v60  ;;  %v1199_v51 = vadd.f32 %v2601_v3, %v893_v50  ;;  %v895_v5 = vpop.f32.mrb[31].mxu1 }
 0x297   : > { %v1284_v52 = vadd.f32 %v2619_v19, %v1197_v25  ;;  %v1201_v20 = vadd.f32 %v2603_v55, %v895_v5 }
 0x298   : > { %1331 = vst [vmem:[%s2623_s10 + $0xe0] sm:$0xff] %v1283_v39  ;;  %v1285_v23 = vadd.f32 %v2617_v18, %v1199_v51 }
 0x299   : > { %1332 = vst [vmem:[%s2623_s10 + $0xe8] sm:$0xff] %v1284_v52  ;;  %v1286_v2 = vadd.f32 %v2619_v19, %v1201_v20 }
 0x29a   : > { %1333 = vst [vmem:[%s2623_s10 + $0xf0] sm:$0xff] %v1285_v23 }
 0x29b   : > { %1334 = vst [vmem:[%s2623_s10 + $0xf8] sm:$0xff] %v1286_v2  ;;  %v899_v40 = vpop.f32.mrb[32].mxu1 }
 0x29c   : > { %v1205_v3 = vadd.f32 %v2605_v56, %v899_v40  ;;  %v901_v6 = vpop.f32.mrb[33].mxu1 }
 0x29d   : > { %v1207_v27 = vadd.f32 %v2607_v58, %v901_v6  ;;  %v903_v28 = vpop.f32.mrb[34].mxu1 }
 0x29e   : > { %v1287_v55 = vadd.f32 %v2617_v18, %v1205_v3  ;;  %v1209_v31 = vadd.f32 %v2609_v59, %v903_v28  ;;  %v905_v32 = vpop.f32.mrb[35].mxu1 }
 0x29f   : > { %v1288_v34 = vadd.f32 %v2619_v19, %v1207_v27  ;;  %v1211_v9 = vadd.f32 %v2611_v8, %v905_v32 }
 0x2a0   : > { %1335 = vst [vmem:[%s2623_s10 + $0x100] sm:$0xff] %v1287_v55  ;;  %v1289_v14 = vadd.f32 %v2617_v18, %v1209_v31 }
 0x2a1   : > { %1336 = vst [vmem:[%s2623_s10 + $0x108] sm:$0xff] %v1288_v34  ;;  %v1290_v56 = vadd.f32 %v2619_v19, %v1211_v9 }
 0x2a2   : > { %1337 = vst [vmem:[%s2623_s10 + $0x110] sm:$0xff] %v1289_v14 }
 0x2a3   : > { %1338 = vst [vmem:[%s2623_s10 + $0x118] sm:$0xff] %v1290_v56 }
 0x2bb   : > { %v1214_v58 = vpop.f32.mrb[36].mxu1 }
 0x2bc   : > { %v1291_v15 = vadd.f32 %v2617_v18, %v1214_v58  ;;  %v1216_v59 = vpop.f32.mrb[37].mxu1 }
 0x2bd   : > { %v1292_v35 = vadd.f32 %v2619_v19, %v1216_v59  ;;  %v1218_v54 = vpop.f32.mrb[38].mxu1 }
 0x2be   : > { %1339 = vst [vmem:[%s2623_s10 + $0x120] sm:$0xff] %v1291_v15  ;;  %v1293_v8 = vadd.f32 %v2617_v18, %v1218_v54  ;;  %v1220_v38 = vpop.f32.mrb[39].mxu1 }
 0x2bf   : > { %1340 = vst [vmem:[%s2623_s10 + $0x128] sm:$0xff] %v1292_v35  ;;  %v1294_v21 = vadd.f32 %v2619_v19, %v1220_v38 }
 0x2c0   : > { %1341 = vst [vmem:[%s2623_s10 + $0x130] sm:$0xff] %v1293_v8 }
 0x2c1   : > { %1342 = vst [vmem:[%s2623_s10 + $0x138] sm:$0xff] %v1294_v21 }
 0x2c3   : > { %v1224_v62 = vpop.f32.mrb[40].mxu1 }
 0x2c4   : > { %v1295_v43 = vadd.f32 %v2617_v18, %v1224_v62  ;;  %v1226_v46 = vpop.f32.mrb[41].mxu1 }
 0x2c5   : > { %v1296_v47 = vadd.f32 %v2619_v19, %v1226_v46  ;;  %v1228_v1 = vpop.f32.mrb[42].mxu1 }
 0x2c6   : > { %1343 = vst [vmem:[%s2623_s10 + $0x140] sm:$0xff] %v1295_v43  ;;  %v1297_v29 = vadd.f32 %v2617_v18, %v1228_v1  ;;  %v1230_v30 = vpop.f32.mrb[43].mxu1 }
 0x2c7   : > { %1344 = vst [vmem:[%s2623_s10 + $0x148] sm:$0xff] %v1296_v47  ;;  %v1298_v22 = vadd.f32 %v2619_v19, %v1230_v30 }
 0x2c8   : > { %1345 = vst [vmem:[%s2623_s10 + $0x150] sm:$0xff] %v1297_v29 }
 0x2c9   : > { %1346 = vst [vmem:[%s2623_s10 + $0x158] sm:$0xff] %v1298_v22 }
 0x2cb   : > { %v1234_v48 = vpop.f32.mrb[44].mxu1 }
 0x2cc   : > { %v1299_v49 = vadd.f32 %v2617_v18, %v1234_v48  ;;  %v1236_v24 = vpop.f32.mrb[45].mxu1 }
 0x2cd   : > { %v1300_v26 = vadd.f32 %v2619_v19, %v1236_v24  ;;  %v1238_v41 = vpop.f32.mrb[46].mxu1 }
 0x2ce   : > { %1347 = vst [vmem:[%s2623_s10 + $0x160] sm:$0xff] %v1299_v49  ;;  %v1301_v53 = vadd.f32 %v2617_v18, %v1238_v41  ;;  %v1240_v61 = vpop.f32.mrb[47].mxu1 }
 0x2cf   : > { %1348 = vst [vmem:[%s2623_s10 + $0x168] sm:$0xff] %v1300_v26  ;;  %v1302_v63 = vadd.f32 %v2619_v19, %v1240_v61 }
 0x2d0   : > { %1349 = vst [vmem:[%s2623_s10 + $0x170] sm:$0xff] %v1301_v53 }
 0x2d1   : > { %1350 = vst [vmem:[%s2623_s10 + $0x178] sm:$0xff] %v1302_v63 }
 0x2d2   : > { %1958 = shalt.err (!%p1955_p4)
}
 0x2d3   : > { %s1959_s27 = scalar_lea.hbm %s2752_s20, 6144  ;;  %s1963_s13 = scalar_lea.hbm %s2808_s6, 12288 }
 0x2d4   : > { %p1960_p9 = scmp.ne.s32.totalorder %s2752_s20, %s1959_s27  ;;  %p1964_p8 = scmp.lt.u32.totalorder %s2752_s20, %s2808_s6 }
 0x2d5   : > { %p1965_p13 = scmp.lt.u32.totalorder %s1963_s13, %s1959_s27  ;;  %p1967_p10 = scmp.lt.u32.totalorder %s1959_s27, %s2752_s20 }
 0x2d6   : > { %p1961_p0 = pnand %p1960_p9, %p2213_p5 }
 0x2d7   : > { %p1966_p6 = por %p1965_p13, %p1964_p8 }
 0x2d8   : > { %p1962_p7 = pneg %p1961_p0 }
 0x2d9   : > { %p1968_p3 = por %p1967_p10, %p1966_p6 }
 0x2db   : > { %p1969_p11 = pnand %p1968_p3, %p1962_p7 }
 0x2dd   : > { %1972 = shalt.err (!%p1969_p11)
}
 0x2de   : > { %s2031_s11 = smov 256   ;;  %s2032_s30 = smov 16  }
 0x2df   : > { %1693 = dma.vmem_to_hbm [thread:$0]  (%p2213_p5), %s2754_s15, 6144, %s2752_s20, %s1352_s25, %s2031_s11, %s2031_s11, %s2032_s30  }
 0x2e0 PF: > { %s1381_s18 = sand.u32 1, %s2007_s21   ;;  %p2832_p12 = scmp.ne.s32.totalorder %s2816_s28, 0 }
 0x2e1   : > { %p2833_p1 = scmp.ge.s32.totalorder %s2019_s24, 2  ;;  %s1382_s9 = scalar_lea.sflag [#allocation4], %s1381_s18 }
 0x2e3   : > { %p1710_p2 = pnand %p2833_p1, %p2832_p12 }
 0x2e5   : > { %2002 = dma.done.wait (!%p1710_p2), %s1382_s9, 6144  }
 0x2e6   : > { %2004 = vsyncadd (!%p1710_p2), %s1382_s9, 4294961152  ;;  %p21_p4 = scmp.ge.s32.totalorder %s2181_s14, 4   ;;  %s2834_s21 = smov %s2011_s22 }
 0x2e7   : > { %s2835_s22 = smov %s2015_s23  ;;  %s2836_s23 = smov %s2209_s8 }
 0x2e8   : > { %s2837_s24 = smov %s2181_s14  ;;  %23 = sbr.rel (!%p21_p4) target bundleno = 9 (0x9), region = 101 }
 0x2ef   :  { %1387 = vsyncpa [#allocation3], 1 }
 0x2f0   :  { %1389 = vsyncpa [#allocation3 + $0x1], 1 }
 0x2f1   :  { %1390 = vsyncpa [#allocation6], 1 }
 0x2f2   :  { %1391 = vsyncpa [#allocation9], 1 }
 0x2f3   :  { %1392 = vsyncpa [#allocation4], 1 }
 0x2f4   :  { %1394 = vsyncpa [#allocation4 + $0x1], 1 }

</bundles_post_ra>
